<compile_context>
chip_gen: v7x
topology: tpu7x:2x2x1
jax: 0.10.0
libtpu: 0.0.40
codegen_flags: <defaults>
</compile_context>

<pallas_src>
import jax
import jax.numpy as jnp
from jax.experimental import pallas as pl
from jax.experimental.pallas import tpu as pltpu


# ----------------------------------------------------------------------------
# Small-model "BERT" config (synthetic, deterministic weights — not a checkpoint)
# ----------------------------------------------------------------------------
B = 2            # batch
S = 8            # sequence length
H = 32           # hidden size
N_HEADS = 2
D_HEAD = H // N_HEADS
I = 64           # intermediate (FFN) size
N_LAYERS = 2
VOCAB = 100
TYPE_VOCAB = 2
MAX_POS = 16
OUT_DIM = 4      # classifier output_dim
LN_EPS = 1e-12
ATT_SCALE = 1.0 / float(D_HEAD) ** 0.5


# ----------------------------------------------------------------------------
# In-kernel helpers (traced inside the Pallas body)
# ----------------------------------------------------------------------------
def _layernorm(x, g, b):
    """LayerNorm over last dim.  x:(M,H)  g,b:(1,H)."""
    mean = jnp.mean(x, axis=-1, keepdims=True)
    cen = x - mean
    var = jnp.mean(cen * cen, axis=-1, keepdims=True)
    return cen * jax.lax.rsqrt(var + LN_EPS) * g + b


def _gelu_tanh(x):
    # TODO(synk): HF BERT default is erf-GELU; tanh approximation differs ~1e-3.
    c = jnp.float32(0.7978845608028654)  # sqrt(2/pi)
    return 0.5 * x * (1.0 + jnp.tanh(c * (x + 0.044715 * x * x * x)))


# ----------------------------------------------------------------------------
# The single fused kernel: embeddings-LN -> N_LAYERS encoder layers -> pooler
# -> classifier head.  Everything resident in VMEM; no grid.
# ----------------------------------------------------------------------------
def _bert_fused_kernel(emb_ref, mask_ref,
                       wqkv_ref, bqkv_ref, wo_ref, bo_ref, ln1g_ref, ln1b_ref,
                       wi_ref, bi_ref, wf_ref, bf_ref, ln2g_ref, ln2b_ref,
                       embg_ref, embb_ref, poolw_ref, poolb_ref,
                       clsw_ref, clsb_ref,
                       out_ref):
    # --- embedding LayerNorm (no residual) ---
    x = _layernorm(emb_ref[...], embg_ref[...], embb_ref[...])        # (B*S, H)

    for l in range(N_LAYERS):                       # static unroll (N_LAYERS=2)
        wo_l = wo_ref[l]                                              # (H, H)

        # --- fused QKV projection: (B*S,H) @ (H,3H) + bias ---
        qkv = jnp.dot(x, wqkv_ref[l],
                      preferred_element_type=jnp.float32) + bqkv_ref[l]

        # --- self-attention, per (batch, head), unrolled in-kernel ---
        batch_parts = []
        for b in range(B):
            mask_b = mask_ref[b]                                      # (1, S)
            rows = slice(b * S, (b + 1) * S)
            attn_b = None
            for h in range(N_HEADS):
                c0 = h * D_HEAD
                q = qkv[rows, c0:c0 + D_HEAD]                         # (S, dh)
                k = qkv[rows, H + c0:H + c0 + D_HEAD]                 # (S, dh)
                v = qkv[rows, 2 * H + c0:2 * H + c0 + D_HEAD]         # (S, dh)
                s = jnp.dot(q, k.T,
                            preferred_element_type=jnp.float32) * ATT_SCALE
                s = s + mask_b                                        # (S, S)
                m = jnp.max(s, axis=-1, keepdims=True)
                p = jnp.exp(s - m)
                p = p * pl.reciprocal(jnp.sum(p, axis=-1, keepdims=True),
                                      approx=True)
                ctx = jnp.dot(p, v, preferred_element_type=jnp.float32)
                # output projection folded per-head: ctx @ Wo[h*dh:(h+1)*dh, :]
                proj = jnp.dot(ctx, wo_l[c0:c0 + D_HEAD, :],
                               preferred_element_type=jnp.float32)    # (S, H)
                attn_b = proj if attn_b is None else attn_b + proj
            batch_parts.append(attn_b)
        attn = jnp.concatenate(batch_parts, axis=0) + bo_ref[l]       # (B*S, H)

        # --- residual + LayerNorm (epilogue of attention output proj) ---
        x = _layernorm(attn + x, ln1g_ref[l], ln1b_ref[l])

        # --- FFN: wi -> GELU -> wf, intermediate never leaves VMEM ---
        inter = _gelu_tanh(jnp.dot(x, wi_ref[l],
                                   preferred_element_type=jnp.float32)
                           + bi_ref[l])                               # (B*S, I)
        ffn = jnp.dot(inter, wf_ref[l],
                      preferred_element_type=jnp.float32) + bf_ref[l]
        x = _layernorm(ffn + x, ln2g_ref[l], ln2b_ref[l])

    # --- pooler (tanh Linear) + classifier head, kernel tail ---
    # Computed on all B*S rows (negligible at this size); CLS rows are
    # selected by the caller with a trivial slice.
    # TODO(synk): dropout before the classifier head is identity (eval mode).
    pooled = jnp.tanh(jnp.dot(x, poolw_ref[...],
                              preferred_element_type=jnp.float32) + poolb_ref[...])
    logits = jnp.dot(pooled, clsw_ref[...],
                     preferred_element_type=jnp.float32) + clsb_ref[...]
    out_ref[...] = logits.astype(out_ref.dtype)                       # (B*S, OUT)


# ----------------------------------------------------------------------------
# Deterministic parameter construction
# ----------------------------------------------------------------------------
def init_params(key):
    std = 0.02
    keys = iter(jax.random.split(key, 64))

    def w(shape):
        return (std * jax.random.normal(next(keys), shape)).astype(jnp.float32)

    params = {
        "word_emb": w((VOCAB, H)),
        "pos_emb": w((MAX_POS, H)),
        "type_emb": w((TYPE_VOCAB, H)),
        "emb_ln_g": jnp.ones((H,), jnp.float32),
        "emb_ln_b": jnp.zeros((H,), jnp.float32),
        "layers": [],
        "pool_w": w((H, H)),
        "pool_b": jnp.zeros((H,), jnp.float32),
        "cls_w": w((H, OUT_DIM)),
        "cls_b": jnp.zeros((OUT_DIM,), jnp.float32),
    }
    for _ in range(N_LAYERS):
        params["layers"].append({
            "wq": w((H, H)), "bq": jnp.zeros((H,), jnp.float32),
            "wk": w((H, H)), "bk": jnp.zeros((H,), jnp.float32),
            "wv": w((H, H)), "bv": jnp.zeros((H,), jnp.float32),
            "wo": w((H, H)), "bo": jnp.zeros((H,), jnp.float32),
            "ln1_g": jnp.ones((H,), jnp.float32),
            "ln1_b": jnp.zeros((H,), jnp.float32),
            "wi": w((H, I)), "bi": jnp.zeros((I,), jnp.float32),
            "wf": w((I, H)), "bf": jnp.zeros((H,), jnp.float32),
            "ln2_g": jnp.ones((H,), jnp.float32),
            "ln2_b": jnp.zeros((H,), jnp.float32),
        })
    return params


def pack_params(params):
    """Stack per-layer weights so the fused kernel indexes them with a static l."""
    L = params["layers"]
    st = lambda f: jnp.stack([f(lp) for lp in L])
    return dict(
        wqkv=st(lambda lp: jnp.concatenate([lp["wq"], lp["wk"], lp["wv"]], axis=1)),  # (L,H,3H)
        bqkv=st(lambda lp: jnp.concatenate([lp["bq"], lp["bk"], lp["bv"]])[None, :]), # (L,1,3H)
        wo=st(lambda lp: lp["wo"]),                       # (L,H,H)
        bo=st(lambda lp: lp["bo"][None, :]),              # (L,1,H)
        ln1g=st(lambda lp: lp["ln1_g"][None, :]),
        ln1b=st(lambda lp: lp["ln1_b"][None, :]),
        wi=st(lambda lp: lp["wi"]),                       # (L,H,I)
        bi=st(lambda lp: lp["bi"][None, :]),              # (L,1,I)
        wf=st(lambda lp: lp["wf"]),                       # (L,I,H)
        bf=st(lambda lp: lp["bf"][None, :]),              # (L,1,H)
        ln2g=st(lambda lp: lp["ln2_g"][None, :]),
        ln2b=st(lambda lp: lp["ln2_b"][None, :]),
    )


# ----------------------------------------------------------------------------
# Forward pass (BertClassifier.forward, output_attentions=False path)
# ----------------------------------------------------------------------------
@jax.jit
def bert_classifier_forward(params, input_ids, attention_mask, token_type_ids):
    Bn, Sn = input_ids.shape

    # --- embeddings: gathers are JAX glue; LN happens inside the fused kernel ---
    word = params["word_emb"][input_ids]                      # (B,S,H)
    pos = params["pos_emb"][jnp.arange(Sn)][None, :, :]       # (1,S,H)
    typ = params["type_emb"][token_type_ids]                  # (B,S,H)
    emb = (word + pos + typ).reshape(Bn * Sn, H).astype(jnp.float32)
    # TODO(synk): embedding/attention/hidden dropouts are identity (eval mode).

    # additive attention mask: (B,1,S), 0 for keep, -1e4 for pad
    add_mask = ((1.0 - attention_mask.astype(jnp.float32)) * -10000.0)[:, None, :]

    pk = pack_params(params)
    vmem = pl.BlockSpec(memory_space=pltpu.MemorySpace.VMEM)

    out_full = pl.pallas_call(
        _bert_fused_kernel,
        out_shape=jax.ShapeDtypeStruct((Bn * Sn, OUT_DIM), jnp.float32),
        in_specs=[vmem] * 20,
        out_specs=vmem,
    )(emb, add_mask,
      pk["wqkv"], pk["bqkv"], pk["wo"], pk["bo"], pk["ln1g"], pk["ln1b"],
      pk["wi"], pk["bi"], pk["wf"], pk["bf"], pk["ln2g"], pk["ln2b"],
      params["emb_ln_g"][None, :], params["emb_ln_b"][None, :],
      params["pool_w"], params["pool_b"][None, :],
      params["cls_w"], params["cls_b"][None, :])

    # select the [CLS]-token rows (cheap XLA slice; keeps the kernel's output
    # store a single full-block write)
    logits = out_full.reshape(Bn, Sn, OUT_DIM)[:, 0, :]                # (B, OUT_DIM)
    return logits
    # TODO(synk): attention probabilities (output_attentions=True inside the
    # PyTorch module) are not materialized; forward() returns logits only.


# ----------------------------------------------------------------------------
if __name__ == "__main__":
    key = jax.random.PRNGKey(0)
    pkey, dkey = jax.random.split(key)

    params = init_params(pkey)

    input_ids = jax.random.randint(dkey, (B, S), 0, VOCAB, dtype=jnp.int32)
    attention_mask = jnp.ones((B, S), dtype=jnp.int32)
    token_type_ids = jnp.zeros((B, S), dtype=jnp.int32)

    logits = bert_classifier_forward(params, input_ids, attention_mask,
                                     token_type_ids)
    logits = jax.block_until_ready(logits)
    assert logits.shape == (B, OUT_DIM) and logits.dtype == jnp.float32
    print("KERNEL_OK")
</pallas_src>

<mosaic_0001>
module attributes {stable_mosaic.version = 11 : i64} {
  func.func @_bert_fused_kernel(%arg0: memref<16x32xf32, #tpu.memory_space<vmem>>, %arg1: memref<2x1x8xf32, #tpu.memory_space<vmem>>, %arg2: memref<2x32x96xf32, #tpu.memory_space<vmem>>, %arg3: memref<2x1x96xf32, #tpu.memory_space<vmem>>, %arg4: memref<2x32x32xf32, #tpu.memory_space<vmem>>, %arg5: memref<2x1x32xf32, #tpu.memory_space<vmem>>, %arg6: memref<2x1x32xf32, #tpu.memory_space<vmem>>, %arg7: memref<2x1x32xf32, #tpu.memory_space<vmem>>, %arg8: memref<2x32x64xf32, #tpu.memory_space<vmem>>, %arg9: memref<2x1x64xf32, #tpu.memory_space<vmem>>, %arg10: memref<2x64x32xf32, #tpu.memory_space<vmem>>, %arg11: memref<2x1x32xf32, #tpu.memory_space<vmem>>, %arg12: memref<2x1x32xf32, #tpu.memory_space<vmem>>, %arg13: memref<2x1x32xf32, #tpu.memory_space<vmem>>, %arg14: memref<1x32xf32, #tpu.memory_space<vmem>>, %arg15: memref<1x32xf32, #tpu.memory_space<vmem>>, %arg16: memref<32x32xf32, #tpu.memory_space<vmem>>, %arg17: memref<1x32xf32, #tpu.memory_space<vmem>>, %arg18: memref<32x4xf32, #tpu.memory_space<vmem>>, %arg19: memref<1x4xf32, #tpu.memory_space<vmem>>, %arg20: memref<16x4xf32, #tpu.memory_space<vmem>>) attributes {dimension_semantics = [], scalar_prefetch = 0 : i64, scratch_operands = 0 : i64, tpu.core_type = #tpu.core_type<tc>} {
    %c0 = arith.constant 0 : index
    %c0_0 = arith.constant 0 : index
    %0 = vector.load %arg0[%c0, %c0_0] : memref<16x32xf32, #tpu.memory_space<vmem>>, vector<16x32xf32>
    %c0_1 = arith.constant 0 : index
    %c0_2 = arith.constant 0 : index
    %1 = vector.load %arg14[%c0_1, %c0_2] : memref<1x32xf32, #tpu.memory_space<vmem>>, vector<1x32xf32>
    %c0_3 = arith.constant 0 : index
    %c0_4 = arith.constant 0 : index
    %2 = vector.load %arg15[%c0_3, %c0_4] : memref<1x32xf32, #tpu.memory_space<vmem>>, vector<1x32xf32>
    %cst = arith.constant dense<0.000000e+00> : vector<16xf32>
    %3 = vector.multi_reduction <add>, %0, %cst [1] : vector<16x32xf32> to vector<16xf32>
    %4 = vector.shape_cast %3 : vector<16xf32> to vector<16x1xf32>
    %cst_5 = arith.constant 3.200000e+01 : f32
    %5 = vector.broadcast %cst_5 : f32 to vector<16x1xf32>
    %6 = arith.divf %4, %5 : vector<16x1xf32>
    %7 = vector.broadcast %6 : vector<16x1xf32> to vector<16x32xf32>
    %8 = arith.subf %0, %7 : vector<16x32xf32>
    %9 = arith.mulf %8, %8 : vector<16x32xf32>
    %cst_6 = arith.constant dense<0.000000e+00> : vector<16xf32>
    %10 = vector.multi_reduction <add>, %9, %cst_6 [1] : vector<16x32xf32> to vector<16xf32>
    %11 = vector.shape_cast %10 : vector<16xf32> to vector<16x1xf32>
    %cst_7 = arith.constant 3.200000e+01 : f32
    %12 = vector.broadcast %cst_7 : f32 to vector<16x1xf32>
    %13 = arith.divf %11, %12 : vector<16x1xf32>
    %cst_8 = arith.constant 9.99999996E-13 : f32
    %14 = vector.broadcast %cst_8 : f32 to vector<16x1xf32>
    %15 = arith.addf %13, %14 : vector<16x1xf32>
    %16 = math.rsqrt %15 : vector<16x1xf32>
    %17 = vector.broadcast %16 : vector<16x1xf32> to vector<16x32xf32>
    %18 = arith.mulf %8, %17 : vector<16x32xf32>
    %19 = vector.broadcast %1 : vector<1x32xf32> to vector<16x32xf32>
    %20 = arith.mulf %18, %19 : vector<16x32xf32>
    %21 = vector.broadcast %2 : vector<1x32xf32> to vector<16x32xf32>
    %22 = arith.addf %20, %21 : vector<16x32xf32>
    %c0_9 = arith.constant 0 : index
    %c0_10 = arith.constant 0 : index
    %c0_11 = arith.constant 0 : index
    %23 = vector.load %arg4[%c0_9, %c0_10, %c0_11] : memref<2x32x32xf32, #tpu.memory_space<vmem>>, vector<1x32x32xf32>
    %24 = vector.shape_cast %23 : vector<1x32x32xf32> to vector<32x32xf32>
    %c0_12 = arith.constant 0 : index
    %c0_13 = arith.constant 0 : index
    %c0_14 = arith.constant 0 : index
    %25 = vector.load %arg2[%c0_12, %c0_13, %c0_14] : memref<2x32x96xf32, #tpu.memory_space<vmem>>, vector<1x32x96xf32>
    %26 = vector.shape_cast %25 : vector<1x32x96xf32> to vector<32x96xf32>
    %cst_15 = arith.constant dense<0.000000e+00> : vector<16x96xf32>
    %27 = tpu.matmul %22, %26, %cst_15 {dimension_numbers = #tpu.dot_dimension_numbers<[1], [0], [0], [1], [0, 0, 1, 1], [], []>} : vector<16x32xf32>, vector<32x96xf32>, vector<16x96xf32> -> vector<16x96xf32>
    %c0_16 = arith.constant 0 : index
    %c0_17 = arith.constant 0 : index
    %c0_18 = arith.constant 0 : index
    %28 = vector.load %arg3[%c0_16, %c0_17, %c0_18] : memref<2x1x96xf32, #tpu.memory_space<vmem>>, vector<1x1x96xf32>
    %29 = vector.shape_cast %28 : vector<1x1x96xf32> to vector<1x96xf32>
    %30 = vector.broadcast %29 : vector<1x96xf32> to vector<16x96xf32>
    %31 = arith.addf %27, %30 : vector<16x96xf32>
    %c0_19 = arith.constant 0 : index
    %c0_20 = arith.constant 0 : index
    %c0_21 = arith.constant 0 : index
    %32 = vector.load %arg1[%c0_19, %c0_20, %c0_21] : memref<2x1x8xf32, #tpu.memory_space<vmem>>, vector<1x1x8xf32>
    %33 = vector.shape_cast %32 : vector<1x1x8xf32> to vector<1x8xf32>
    %34 = vector.extract_strided_slice %31 {offsets = [0, 0], sizes = [8, 16], strides = [1, 1]} : vector<16x96xf32> to vector<8x16xf32>
    %35 = vector.extract_strided_slice %31 {offsets = [0, 32], sizes = [8, 16], strides = [1, 1]} : vector<16x96xf32> to vector<8x16xf32>
    %36 = vector.extract_strided_slice %31 {offsets = [0, 64], sizes = [8, 16], strides = [1, 1]} : vector<16x96xf32> to vector<8x16xf32>
    %37 = tpu.transpose %35, [1, 0] : vector<8x16xf32> -> vector<16x8xf32>
    %cst_22 = arith.constant dense<0.000000e+00> : vector<8x8xf32>
    %38 = tpu.matmul %34, %37, %cst_22 {dimension_numbers = #tpu.dot_dimension_numbers<[1], [0], [0], [1], [0, 0, 1, 1], [], []>} : vector<8x16xf32>, vector<16x8xf32>, vector<8x8xf32> -> vector<8x8xf32>
    %cst_23 = arith.constant 2.500000e-01 : f32
    %39 = vector.broadcast %cst_23 : f32 to vector<8x8xf32>
    %40 = arith.mulf %38, %39 : vector<8x8xf32>
    %41 = vector.broadcast %33 : vector<1x8xf32> to vector<8x8xf32>
    %42 = arith.addf %40, %41 : vector<8x8xf32>
    %cst_24 = arith.constant dense<0xFF800000> : vector<8xf32>
    %43 = vector.multi_reduction <maximumf>, %42, %cst_24 [1] : vector<8x8xf32> to vector<8xf32>
    %44 = vector.shape_cast %43 : vector<8xf32> to vector<8x1xf32>
    %45 = vector.broadcast %44 : vector<8x1xf32> to vector<8x8xf32>
    %46 = arith.subf %42, %45 : vector<8x8xf32>
    %47 = math.exp %46 : vector<8x8xf32>
    %cst_25 = arith.constant dense<0.000000e+00> : vector<8xf32>
    %48 = vector.multi_reduction <add>, %47, %cst_25 [1] : vector<8x8xf32> to vector<8xf32>
    %49 = vector.shape_cast %48 : vector<8xf32> to vector<8x1xf32>
    %50 = tpu.reciprocal %49 {approx = true} : vector<8x1xf32> -> vector<8x1xf32>
    %51 = vector.broadcast %50 : vector<8x1xf32> to vector<8x8xf32>
    %52 = arith.mulf %47, %51 : vector<8x8xf32>
    %cst_26 = arith.constant dense<0.000000e+00> : vector<8x16xf32>
    %53 = tpu.matmul %52, %36, %cst_26 {dimension_numbers = #tpu.dot_dimension_numbers<[1], [0], [0], [1], [0, 0, 1, 1], [], []>} : vector<8x8xf32>, vector<8x16xf32>, vector<8x16xf32> -> vector<8x16xf32>
    %54 = vector.extract_strided_slice %24 {offsets = [0, 0], sizes = [16, 32], strides = [1, 1]} : vector<32x32xf32> to vector<16x32xf32>
    %cst_27 = arith.constant dense<0.000000e+00> : vector<8x32xf32>
    %55 = tpu.matmul %53, %54, %cst_27 {dimension_numbers = #tpu.dot_dimension_numbers<[1], [0], [0], [1], [0, 0, 1, 1], [], []>} : vector<8x16xf32>, vector<16x32xf32>, vector<8x32xf32> -> vector<8x32xf32>
    %56 = vector.extract_strided_slice %31 {offsets = [0, 16], sizes = [8, 16], strides = [1, 1]} : vector<16x96xf32> to vector<8x16xf32>
    %57 = vector.extract_strided_slice %31 {offsets = [0, 48], sizes = [8, 16], strides = [1, 1]} : vector<16x96xf32> to vector<8x16xf32>
    %58 = vector.extract_strided_slice %31 {offsets = [0, 80], sizes = [8, 16], strides = [1, 1]} : vector<16x96xf32> to vector<8x16xf32>
    %59 = tpu.transpose %57, [1, 0] : vector<8x16xf32> -> vector<16x8xf32>
    %cst_28 = arith.constant dense<0.000000e+00> : vector<8x8xf32>
    %60 = tpu.matmul %56, %59, %cst_28 {dimension_numbers = #tpu.dot_dimension_numbers<[1], [0], [0], [1], [0, 0, 1, 1], [], []>} : vector<8x16xf32>, vector<16x8xf32>, vector<8x8xf32> -> vector<8x8xf32>
    %cst_29 = arith.constant 2.500000e-01 : f32
    %61 = vector.broadcast %cst_29 : f32 to vector<8x8xf32>
    %62 = arith.mulf %60, %61 : vector<8x8xf32>
    %63 = vector.broadcast %33 : vector<1x8xf32> to vector<8x8xf32>
    %64 = arith.addf %62, %63 : vector<8x8xf32>
    %cst_30 = arith.constant dense<0xFF800000> : vector<8xf32>
    %65 = vector.multi_reduction <maximumf>, %64, %cst_30 [1] : vector<8x8xf32> to vector<8xf32>
    %66 = vector.shape_cast %65 : vector<8xf32> to vector<8x1xf32>
    %67 = vector.broadcast %66 : vector<8x1xf32> to vector<8x8xf32>
    %68 = arith.subf %64, %67 : vector<8x8xf32>
    %69 = math.exp %68 : vector<8x8xf32>
    %cst_31 = arith.constant dense<0.000000e+00> : vector<8xf32>
    %70 = vector.multi_reduction <add>, %69, %cst_31 [1] : vector<8x8xf32> to vector<8xf32>
    %71 = vector.shape_cast %70 : vector<8xf32> to vector<8x1xf32>
    %72 = tpu.reciprocal %71 {approx = true} : vector<8x1xf32> -> vector<8x1xf32>
    %73 = vector.broadcast %72 : vector<8x1xf32> to vector<8x8xf32>
    %74 = arith.mulf %69, %73 : vector<8x8xf32>
    %cst_32 = arith.constant dense<0.000000e+00> : vector<8x16xf32>
    %75 = tpu.matmul %74, %58, %cst_32 {dimension_numbers = #tpu.dot_dimension_numbers<[1], [0], [0], [1], [0, 0, 1, 1], [], []>} : vector<8x8xf32>, vector<8x16xf32>, vector<8x16xf32> -> vector<8x16xf32>
    %76 = vector.extract_strided_slice %24 {offsets = [16, 0], sizes = [16, 32], strides = [1, 1]} : vector<32x32xf32> to vector<16x32xf32>
    %cst_33 = arith.constant dense<0.000000e+00> : vector<8x32xf32>
    %77 = tpu.matmul %75, %76, %cst_33 {dimension_numbers = #tpu.dot_dimension_numbers<[1], [0], [0], [1], [0, 0, 1, 1], [], []>} : vector<8x16xf32>, vector<16x32xf32>, vector<8x32xf32> -> vector<8x32xf32>
    %78 = arith.addf %55, %77 : vector<8x32xf32>
    %c1 = arith.constant 1 : index
    %c0_34 = arith.constant 0 : index
    %c0_35 = arith.constant 0 : index
    %79 = vector.load %arg1[%c1, %c0_34, %c0_35] : memref<2x1x8xf32, #tpu.memory_space<vmem>>, vector<1x1x8xf32>
    %80 = vector.shape_cast %79 : vector<1x1x8xf32> to vector<1x8xf32>
    %81 = vector.extract_strided_slice %31 {offsets = [8, 0], sizes = [8, 16], strides = [1, 1]} : vector<16x96xf32> to vector<8x16xf32>
    %82 = vector.extract_strided_slice %31 {offsets = [8, 32], sizes = [8, 16], strides = [1, 1]} : vector<16x96xf32> to vector<8x16xf32>
    %83 = vector.extract_strided_slice %31 {offsets = [8, 64], sizes = [8, 16], strides = [1, 1]} : vector<16x96xf32> to vector<8x16xf32>
    %84 = tpu.transpose %82, [1, 0] : vector<8x16xf32> -> vector<16x8xf32>
    %cst_36 = arith.constant dense<0.000000e+00> : vector<8x8xf32>
    %85 = tpu.matmul %81, %84, %cst_36 {dimension_numbers = #tpu.dot_dimension_numbers<[1], [0], [0], [1], [0, 0, 1, 1], [], []>} : vector<8x16xf32>, vector<16x8xf32>, vector<8x8xf32> -> vector<8x8xf32>
    %cst_37 = arith.constant 2.500000e-01 : f32
    %86 = vector.broadcast %cst_37 : f32 to vector<8x8xf32>
    %87 = arith.mulf %85, %86 : vector<8x8xf32>
    %88 = vector.broadcast %80 : vector<1x8xf32> to vector<8x8xf32>
    %89 = arith.addf %87, %88 : vector<8x8xf32>
    %cst_38 = arith.constant dense<0xFF800000> : vector<8xf32>
    %90 = vector.multi_reduction <maximumf>, %89, %cst_38 [1] : vector<8x8xf32> to vector<8xf32>
    %91 = vector.shape_cast %90 : vector<8xf32> to vector<8x1xf32>
    %92 = vector.broadcast %91 : vector<8x1xf32> to vector<8x8xf32>
    %93 = arith.subf %89, %92 : vector<8x8xf32>
    %94 = math.exp %93 : vector<8x8xf32>
    %cst_39 = arith.constant dense<0.000000e+00> : vector<8xf32>
    %95 = vector.multi_reduction <add>, %94, %cst_39 [1] : vector<8x8xf32> to vector<8xf32>
    %96 = vector.shape_cast %95 : vector<8xf32> to vector<8x1xf32>
    %97 = tpu.reciprocal %96 {approx = true} : vector<8x1xf32> -> vector<8x1xf32>
    %98 = vector.broadcast %97 : vector<8x1xf32> to vector<8x8xf32>
    %99 = arith.mulf %94, %98 : vector<8x8xf32>
    %cst_40 = arith.constant dense<0.000000e+00> : vector<8x16xf32>
    %100 = tpu.matmul %99, %83, %cst_40 {dimension_numbers = #tpu.dot_dimension_numbers<[1], [0], [0], [1], [0, 0, 1, 1], [], []>} : vector<8x8xf32>, vector<8x16xf32>, vector<8x16xf32> -> vector<8x16xf32>
    %101 = vector.extract_strided_slice %24 {offsets = [0, 0], sizes = [16, 32], strides = [1, 1]} : vector<32x32xf32> to vector<16x32xf32>
    %cst_41 = arith.constant dense<0.000000e+00> : vector<8x32xf32>
    %102 = tpu.matmul %100, %101, %cst_41 {dimension_numbers = #tpu.dot_dimension_numbers<[1], [0], [0], [1], [0, 0, 1, 1], [], []>} : vector<8x16xf32>, vector<16x32xf32>, vector<8x32xf32> -> vector<8x32xf32>
    %103 = vector.extract_strided_slice %31 {offsets = [8, 16], sizes = [8, 16], strides = [1, 1]} : vector<16x96xf32> to vector<8x16xf32>
    %104 = vector.extract_strided_slice %31 {offsets = [8, 48], sizes = [8, 16], strides = [1, 1]} : vector<16x96xf32> to vector<8x16xf32>
    %105 = vector.extract_strided_slice %31 {offsets = [8, 80], sizes = [8, 16], strides = [1, 1]} : vector<16x96xf32> to vector<8x16xf32>
    %106 = tpu.transpose %104, [1, 0] : vector<8x16xf32> -> vector<16x8xf32>
    %cst_42 = arith.constant dense<0.000000e+00> : vector<8x8xf32>
    %107 = tpu.matmul %103, %106, %cst_42 {dimension_numbers = #tpu.dot_dimension_numbers<[1], [0], [0], [1], [0, 0, 1, 1], [], []>} : vector<8x16xf32>, vector<16x8xf32>, vector<8x8xf32> -> vector<8x8xf32>
    %cst_43 = arith.constant 2.500000e-01 : f32
    %108 = vector.broadcast %cst_43 : f32 to vector<8x8xf32>
    %109 = arith.mulf %107, %108 : vector<8x8xf32>
    %110 = vector.broadcast %80 : vector<1x8xf32> to vector<8x8xf32>
    %111 = arith.addf %109, %110 : vector<8x8xf32>
    %cst_44 = arith.constant dense<0xFF800000> : vector<8xf32>
    %112 = vector.multi_reduction <maximumf>, %111, %cst_44 [1] : vector<8x8xf32> to vector<8xf32>
    %113 = vector.shape_cast %112 : vector<8xf32> to vector<8x1xf32>
    %114 = vector.broadcast %113 : vector<8x1xf32> to vector<8x8xf32>
    %115 = arith.subf %111, %114 : vector<8x8xf32>
    %116 = math.exp %115 : vector<8x8xf32>
    %cst_45 = arith.constant dense<0.000000e+00> : vector<8xf32>
    %117 = vector.multi_reduction <add>, %116, %cst_45 [1] : vector<8x8xf32> to vector<8xf32>
    %118 = vector.shape_cast %117 : vector<8xf32> to vector<8x1xf32>
    %119 = tpu.reciprocal %118 {approx = true} : vector<8x1xf32> -> vector<8x1xf32>
    %120 = vector.broadcast %119 : vector<8x1xf32> to vector<8x8xf32>
    %121 = arith.mulf %116, %120 : vector<8x8xf32>
    %cst_46 = arith.constant dense<0.000000e+00> : vector<8x16xf32>
    %122 = tpu.matmul %121, %105, %cst_46 {dimension_numbers = #tpu.dot_dimension_numbers<[1], [0], [0], [1], [0, 0, 1, 1], [], []>} : vector<8x8xf32>, vector<8x16xf32>, vector<8x16xf32> -> vector<8x16xf32>
    %123 = vector.extract_strided_slice %24 {offsets = [16, 0], sizes = [16, 32], strides = [1, 1]} : vector<32x32xf32> to vector<16x32xf32>
    %cst_47 = arith.constant dense<0.000000e+00> : vector<8x32xf32>
    %124 = tpu.matmul %122, %123, %cst_47 {dimension_numbers = #tpu.dot_dimension_numbers<[1], [0], [0], [1], [0, 0, 1, 1], [], []>} : vector<8x16xf32>, vector<16x32xf32>, vector<8x32xf32> -> vector<8x32xf32>
    %125 = arith.addf %102, %124 : vector<8x32xf32>
    %126 = tpu.concatenate %78, %125 in 0 : vector<8x32xf32>, vector<8x32xf32> -> vector<16x32xf32>
    %c0_48 = arith.constant 0 : index
    %c0_49 = arith.constant 0 : index
    %c0_50 = arith.constant 0 : index
    %127 = vector.load %arg5[%c0_48, %c0_49, %c0_50] : memref<2x1x32xf32, #tpu.memory_space<vmem>>, vector<1x1x32xf32>
    %128 = vector.shape_cast %127 : vector<1x1x32xf32> to vector<1x32xf32>
    %129 = vector.broadcast %128 : vector<1x32xf32> to vector<16x32xf32>
    %130 = arith.addf %126, %129 : vector<16x32xf32>
    %131 = arith.addf %130, %22 : vector<16x32xf32>
    %c0_51 = arith.constant 0 : index
    %c0_52 = arith.constant 0 : index
    %c0_53 = arith.constant 0 : index
    %132 = vector.load %arg6[%c0_51, %c0_52, %c0_53] : memref<2x1x32xf32, #tpu.memory_space<vmem>>, vector<1x1x32xf32>
    %133 = vector.shape_cast %132 : vector<1x1x32xf32> to vector<1x32xf32>
    %c0_54 = arith.constant 0 : index
    %c0_55 = arith.constant 0 : index
    %c0_56 = arith.constant 0 : index
    %134 = vector.load %arg7[%c0_54, %c0_55, %c0_56] : memref<2x1x32xf32, #tpu.memory_space<vmem>>, vector<1x1x32xf32>
    %135 = vector.shape_cast %134 : vector<1x1x32xf32> to vector<1x32xf32>
    %cst_57 = arith.constant dense<0.000000e+00> : vector<16xf32>
    %136 = vector.multi_reduction <add>, %131, %cst_57 [1] : vector<16x32xf32> to vector<16xf32>
    %137 = vector.shape_cast %136 : vector<16xf32> to vector<16x1xf32>
    %cst_58 = arith.constant 3.200000e+01 : f32
    %138 = vector.broadcast %cst_58 : f32 to vector<16x1xf32>
    %139 = arith.divf %137, %138 : vector<16x1xf32>
    %140 = vector.broadcast %139 : vector<16x1xf32> to vector<16x32xf32>
    %141 = arith.subf %131, %140 : vector<16x32xf32>
    %142 = arith.mulf %141, %141 : vector<16x32xf32>
    %cst_59 = arith.constant dense<0.000000e+00> : vector<16xf32>
    %143 = vector.multi_reduction <add>, %142, %cst_59 [1] : vector<16x32xf32> to vector<16xf32>
    %144 = vector.shape_cast %143 : vector<16xf32> to vector<16x1xf32>
    %cst_60 = arith.constant 3.200000e+01 : f32
    %145 = vector.broadcast %cst_60 : f32 to vector<16x1xf32>
    %146 = arith.divf %144, %145 : vector<16x1xf32>
    %cst_61 = arith.constant 9.99999996E-13 : f32
    %147 = vector.broadcast %cst_61 : f32 to vector<16x1xf32>
    %148 = arith.addf %146, %147 : vector<16x1xf32>
    %149 = math.rsqrt %148 : vector<16x1xf32>
    %150 = vector.broadcast %149 : vector<16x1xf32> to vector<16x32xf32>
    %151 = arith.mulf %141, %150 : vector<16x32xf32>
    %152 = vector.broadcast %133 : vector<1x32xf32> to vector<16x32xf32>
    %153 = arith.mulf %151, %152 : vector<16x32xf32>
    %154 = vector.broadcast %135 : vector<1x32xf32> to vector<16x32xf32>
    %155 = arith.addf %153, %154 : vector<16x32xf32>
    %c0_62 = arith.constant 0 : index
    %c0_63 = arith.constant 0 : index
    %c0_64 = arith.constant 0 : index
    %156 = vector.load %arg8[%c0_62, %c0_63, %c0_64] : memref<2x32x64xf32, #tpu.memory_space<vmem>>, vector<1x32x64xf32>
    %157 = vector.shape_cast %156 : vector<1x32x64xf32> to vector<32x64xf32>
    %cst_65 = arith.constant dense<0.000000e+00> : vector<16x64xf32>
    %158 = tpu.matmul %155, %157, %cst_65 {dimension_numbers = #tpu.dot_dimension_numbers<[1], [0], [0], [1], [0, 0, 1, 1], [], []>} : vector<16x32xf32>, vector<32x64xf32>, vector<16x64xf32> -> vector<16x64xf32>
    %c0_66 = arith.constant 0 : index
    %c0_67 = arith.constant 0 : index
    %c0_68 = arith.constant 0 : index
    %159 = vector.load %arg9[%c0_66, %c0_67, %c0_68] : memref<2x1x64xf32, #tpu.memory_space<vmem>>, vector<1x1x64xf32>
    %160 = vector.shape_cast %159 : vector<1x1x64xf32> to vector<1x64xf32>
    %161 = vector.broadcast %160 : vector<1x64xf32> to vector<16x64xf32>
    %162 = arith.addf %158, %161 : vector<16x64xf32>
    %cst_69 = arith.constant 5.000000e-01 : f32
    %163 = vector.broadcast %cst_69 : f32 to vector<16x64xf32>
    %164 = arith.mulf %163, %162 : vector<16x64xf32>
    %cst_70 = arith.constant 4.471500e-02 : f32
    %165 = vector.broadcast %cst_70 : f32 to vector<16x64xf32>
    %166 = arith.mulf %165, %162 : vector<16x64xf32>
    %167 = arith.mulf %166, %162 : vector<16x64xf32>
    %168 = arith.mulf %167, %162 : vector<16x64xf32>
    %169 = arith.addf %162, %168 : vector<16x64xf32>
    %cst_71 = arith.constant 0.797884583 : f32
    %170 = vector.broadcast %cst_71 : f32 to vector<16x64xf32>
    %171 = arith.mulf %170, %169 : vector<16x64xf32>
    %172 = math.tanh %171 : vector<16x64xf32>
    %cst_72 = arith.constant 1.000000e+00 : f32
    %173 = vector.broadcast %cst_72 : f32 to vector<16x64xf32>
    %174 = arith.addf %173, %172 : vector<16x64xf32>
    %175 = arith.mulf %164, %174 : vector<16x64xf32>
    %c0_73 = arith.constant 0 : index
    %c0_74 = arith.constant 0 : index
    %c0_75 = arith.constant 0 : index
    %176 = vector.load %arg10[%c0_73, %c0_74, %c0_75] : memref<2x64x32xf32, #tpu.memory_space<vmem>>, vector<1x64x32xf32>
    %177 = vector.shape_cast %176 : vector<1x64x32xf32> to vector<64x32xf32>
    %cst_76 = arith.constant dense<0.000000e+00> : vector<16x32xf32>
    %178 = tpu.matmul %175, %177, %cst_76 {dimension_numbers = #tpu.dot_dimension_numbers<[1], [0], [0], [1], [0, 0, 1, 1], [], []>} : vector<16x64xf32>, vector<64x32xf32>, vector<16x32xf32> -> vector<16x32xf32>
    %c0_77 = arith.constant 0 : index
    %c0_78 = arith.constant 0 : index
    %c0_79 = arith.constant 0 : index
    %179 = vector.load %arg11[%c0_77, %c0_78, %c0_79] : memref<2x1x32xf32, #tpu.memory_space<vmem>>, vector<1x1x32xf32>
    %180 = vector.shape_cast %179 : vector<1x1x32xf32> to vector<1x32xf32>
    %181 = vector.broadcast %180 : vector<1x32xf32> to vector<16x32xf32>
    %182 = arith.addf %178, %181 : vector<16x32xf32>
    %183 = arith.addf %182, %155 : vector<16x32xf32>
    %c0_80 = arith.constant 0 : index
    %c0_81 = arith.constant 0 : index
    %c0_82 = arith.constant 0 : index
    %184 = vector.load %arg12[%c0_80, %c0_81, %c0_82] : memref<2x1x32xf32, #tpu.memory_space<vmem>>, vector<1x1x32xf32>
    %185 = vector.shape_cast %184 : vector<1x1x32xf32> to vector<1x32xf32>
    %c0_83 = arith.constant 0 : index
    %c0_84 = arith.constant 0 : index
    %c0_85 = arith.constant 0 : index
    %186 = vector.load %arg13[%c0_83, %c0_84, %c0_85] : memref<2x1x32xf32, #tpu.memory_space<vmem>>, vector<1x1x32xf32>
    %187 = vector.shape_cast %186 : vector<1x1x32xf32> to vector<1x32xf32>
    %cst_86 = arith.constant dense<0.000000e+00> : vector<16xf32>
    %188 = vector.multi_reduction <add>, %183, %cst_86 [1] : vector<16x32xf32> to vector<16xf32>
    %189 = vector.shape_cast %188 : vector<16xf32> to vector<16x1xf32>
    %cst_87 = arith.constant 3.200000e+01 : f32
    %190 = vector.broadcast %cst_87 : f32 to vector<16x1xf32>
    %191 = arith.divf %189, %190 : vector<16x1xf32>
    %192 = vector.broadcast %191 : vector<16x1xf32> to vector<16x32xf32>
    %193 = arith.subf %183, %192 : vector<16x32xf32>
    %194 = arith.mulf %193, %193 : vector<16x32xf32>
    %cst_88 = arith.constant dense<0.000000e+00> : vector<16xf32>
    %195 = vector.multi_reduction <add>, %194, %cst_88 [1] : vector<16x32xf32> to vector<16xf32>
    %196 = vector.shape_cast %195 : vector<16xf32> to vector<16x1xf32>
    %cst_89 = arith.constant 3.200000e+01 : f32
    %197 = vector.broadcast %cst_89 : f32 to vector<16x1xf32>
    %198 = arith.divf %196, %197 : vector<16x1xf32>
    %cst_90 = arith.constant 9.99999996E-13 : f32
    %199 = vector.broadcast %cst_90 : f32 to vector<16x1xf32>
    %200 = arith.addf %198, %199 : vector<16x1xf32>
    %201 = math.rsqrt %200 : vector<16x1xf32>
    %202 = vector.broadcast %201 : vector<16x1xf32> to vector<16x32xf32>
    %203 = arith.mulf %193, %202 : vector<16x32xf32>
    %204 = vector.broadcast %185 : vector<1x32xf32> to vector<16x32xf32>
    %205 = arith.mulf %203, %204 : vector<16x32xf32>
    %206 = vector.broadcast %187 : vector<1x32xf32> to vector<16x32xf32>
    %207 = arith.addf %205, %206 : vector<16x32xf32>
    %c1_91 = arith.constant 1 : index
    %c0_92 = arith.constant 0 : index
    %c0_93 = arith.constant 0 : index
    %208 = vector.load %arg4[%c1_91, %c0_92, %c0_93] : memref<2x32x32xf32, #tpu.memory_space<vmem>>, vector<1x32x32xf32>
    %209 = vector.shape_cast %208 : vector<1x32x32xf32> to vector<32x32xf32>
    %c1_94 = arith.constant 1 : index
    %c0_95 = arith.constant 0 : index
    %c0_96 = arith.constant 0 : index
    %210 = vector.load %arg2[%c1_94, %c0_95, %c0_96] : memref<2x32x96xf32, #tpu.memory_space<vmem>>, vector<1x32x96xf32>
    %211 = vector.shape_cast %210 : vector<1x32x96xf32> to vector<32x96xf32>
    %cst_97 = arith.constant dense<0.000000e+00> : vector<16x96xf32>
    %212 = tpu.matmul %207, %211, %cst_97 {dimension_numbers = #tpu.dot_dimension_numbers<[1], [0], [0], [1], [0, 0, 1, 1], [], []>} : vector<16x32xf32>, vector<32x96xf32>, vector<16x96xf32> -> vector<16x96xf32>
    %c1_98 = arith.constant 1 : index
    %c0_99 = arith.constant 0 : index
    %c0_100 = arith.constant 0 : index
    %213 = vector.load %arg3[%c1_98, %c0_99, %c0_100] : memref<2x1x96xf32, #tpu.memory_space<vmem>>, vector<1x1x96xf32>
    %214 = vector.shape_cast %213 : vector<1x1x96xf32> to vector<1x96xf32>
    %215 = vector.broadcast %214 : vector<1x96xf32> to vector<16x96xf32>
    %216 = arith.addf %212, %215 : vector<16x96xf32>
    %c0_101 = arith.constant 0 : index
    %c0_102 = arith.constant 0 : index
    %c0_103 = arith.constant 0 : index
    %217 = vector.load %arg1[%c0_101, %c0_102, %c0_103] : memref<2x1x8xf32, #tpu.memory_space<vmem>>, vector<1x1x8xf32>
    %218 = vector.shape_cast %217 : vector<1x1x8xf32> to vector<1x8xf32>
    %219 = vector.extract_strided_slice %216 {offsets = [0, 0], sizes = [8, 16], strides = [1, 1]} : vector<16x96xf32> to vector<8x16xf32>
    %220 = vector.extract_strided_slice %216 {offsets = [0, 32], sizes = [8, 16], strides = [1, 1]} : vector<16x96xf32> to vector<8x16xf32>
    %221 = vector.extract_strided_slice %216 {offsets = [0, 64], sizes = [8, 16], strides = [1, 1]} : vector<16x96xf32> to vector<8x16xf32>
    %222 = tpu.transpose %220, [1, 0] : vector<8x16xf32> -> vector<16x8xf32>
    %cst_104 = arith.constant dense<0.000000e+00> : vector<8x8xf32>
    %223 = tpu.matmul %219, %222, %cst_104 {dimension_numbers = #tpu.dot_dimension_numbers<[1], [0], [0], [1], [0, 0, 1, 1], [], []>} : vector<8x16xf32>, vector<16x8xf32>, vector<8x8xf32> -> vector<8x8xf32>
    %cst_105 = arith.constant 2.500000e-01 : f32
    %224 = vector.broadcast %cst_105 : f32 to vector<8x8xf32>
    %225 = arith.mulf %223, %224 : vector<8x8xf32>
    %226 = vector.broadcast %218 : vector<1x8xf32> to vector<8x8xf32>
    %227 = arith.addf %225, %226 : vector<8x8xf32>
    %cst_106 = arith.constant dense<0xFF800000> : vector<8xf32>
    %228 = vector.multi_reduction <maximumf>, %227, %cst_106 [1] : vector<8x8xf32> to vector<8xf32>
    %229 = vector.shape_cast %228 : vector<8xf32> to vector<8x1xf32>
    %230 = vector.broadcast %229 : vector<8x1xf32> to vector<8x8xf32>
    %231 = arith.subf %227, %230 : vector<8x8xf32>
    %232 = math.exp %231 : vector<8x8xf32>
    %cst_107 = arith.constant dense<0.000000e+00> : vector<8xf32>
    %233 = vector.multi_reduction <add>, %232, %cst_107 [1] : vector<8x8xf32> to vector<8xf32>
    %234 = vector.shape_cast %233 : vector<8xf32> to vector<8x1xf32>
    %235 = tpu.reciprocal %234 {approx = true} : vector<8x1xf32> -> vector<8x1xf32>
    %236 = vector.broadcast %235 : vector<8x1xf32> to vector<8x8xf32>
    %237 = arith.mulf %232, %236 : vector<8x8xf32>
    %cst_108 = arith.constant dense<0.000000e+00> : vector<8x16xf32>
    %238 = tpu.matmul %237, %221, %cst_108 {dimension_numbers = #tpu.dot_dimension_numbers<[1], [0], [0], [1], [0, 0, 1, 1], [], []>} : vector<8x8xf32>, vector<8x16xf32>, vector<8x16xf32> -> vector<8x16xf32>
    %239 = vector.extract_strided_slice %209 {offsets = [0, 0], sizes = [16, 32], strides = [1, 1]} : vector<32x32xf32> to vector<16x32xf32>
    %cst_109 = arith.constant dense<0.000000e+00> : vector<8x32xf32>
    %240 = tpu.matmul %238, %239, %cst_109 {dimension_numbers = #tpu.dot_dimension_numbers<[1], [0], [0], [1], [0, 0, 1, 1], [], []>} : vector<8x16xf32>, vector<16x32xf32>, vector<8x32xf32> -> vector<8x32xf32>
    %241 = vector.extract_strided_slice %216 {offsets = [0, 16], sizes = [8, 16], strides = [1, 1]} : vector<16x96xf32> to vector<8x16xf32>
    %242 = vector.extract_strided_slice %216 {offsets = [0, 48], sizes = [8, 16], strides = [1, 1]} : vector<16x96xf32> to vector<8x16xf32>
    %243 = vector.extract_strided_slice %216 {offsets = [0, 80], sizes = [8, 16], strides = [1, 1]} : vector<16x96xf32> to vector<8x16xf32>
    %244 = tpu.transpose %242, [1, 0] : vector<8x16xf32> -> vector<16x8xf32>
    %cst_110 = arith.constant dense<0.000000e+00> : vector<8x8xf32>
    %245 = tpu.matmul %241, %244, %cst_110 {dimension_numbers = #tpu.dot_dimension_numbers<[1], [0], [0], [1], [0, 0, 1, 1], [], []>} : vector<8x16xf32>, vector<16x8xf32>, vector<8x8xf32> -> vector<8x8xf32>
    %cst_111 = arith.constant 2.500000e-01 : f32
    %246 = vector.broadcast %cst_111 : f32 to vector<8x8xf32>
    %247 = arith.mulf %245, %246 : vector<8x8xf32>
    %248 = vector.broadcast %218 : vector<1x8xf32> to vector<8x8xf32>
    %249 = arith.addf %247, %248 : vector<8x8xf32>
    %cst_112 = arith.constant dense<0xFF800000> : vector<8xf32>
    %250 = vector.multi_reduction <maximumf>, %249, %cst_112 [1] : vector<8x8xf32> to vector<8xf32>
    %251 = vector.shape_cast %250 : vector<8xf32> to vector<8x1xf32>
    %252 = vector.broadcast %251 : vector<8x1xf32> to vector<8x8xf32>
    %253 = arith.subf %249, %252 : vector<8x8xf32>
    %254 = math.exp %253 : vector<8x8xf32>
    %cst_113 = arith.constant dense<0.000000e+00> : vector<8xf32>
    %255 = vector.multi_reduction <add>, %254, %cst_113 [1] : vector<8x8xf32> to vector<8xf32>
    %256 = vector.shape_cast %255 : vector<8xf32> to vector<8x1xf32>
    %257 = tpu.reciprocal %256 {approx = true} : vector<8x1xf32> -> vector<8x1xf32>
    %258 = vector.broadcast %257 : vector<8x1xf32> to vector<8x8xf32>
    %259 = arith.mulf %254, %258 : vector<8x8xf32>
    %cst_114 = arith.constant dense<0.000000e+00> : vector<8x16xf32>
    %260 = tpu.matmul %259, %243, %cst_114 {dimension_numbers = #tpu.dot_dimension_numbers<[1], [0], [0], [1], [0, 0, 1, 1], [], []>} : vector<8x8xf32>, vector<8x16xf32>, vector<8x16xf32> -> vector<8x16xf32>
    %261 = vector.extract_strided_slice %209 {offsets = [16, 0], sizes = [16, 32], strides = [1, 1]} : vector<32x32xf32> to vector<16x32xf32>
    %cst_115 = arith.constant dense<0.000000e+00> : vector<8x32xf32>
    %262 = tpu.matmul %260, %261, %cst_115 {dimension_numbers = #tpu.dot_dimension_numbers<[1], [0], [0], [1], [0, 0, 1, 1], [], []>} : vector<8x16xf32>, vector<16x32xf32>, vector<8x32xf32> -> vector<8x32xf32>
    %263 = arith.addf %240, %262 : vector<8x32xf32>
    %c1_116 = arith.constant 1 : index
    %c0_117 = arith.constant 0 : index
    %c0_118 = arith.constant 0 : index
    %264 = vector.load %arg1[%c1_116, %c0_117, %c0_118] : memref<2x1x8xf32, #tpu.memory_space<vmem>>, vector<1x1x8xf32>
    %265 = vector.shape_cast %264 : vector<1x1x8xf32> to vector<1x8xf32>
    %266 = vector.extract_strided_slice %216 {offsets = [8, 0], sizes = [8, 16], strides = [1, 1]} : vector<16x96xf32> to vector<8x16xf32>
    %267 = vector.extract_strided_slice %216 {offsets = [8, 32], sizes = [8, 16], strides = [1, 1]} : vector<16x96xf32> to vector<8x16xf32>
    %268 = vector.extract_strided_slice %216 {offsets = [8, 64], sizes = [8, 16], strides = [1, 1]} : vector<16x96xf32> to vector<8x16xf32>
    %269 = tpu.transpose %267, [1, 0] : vector<8x16xf32> -> vector<16x8xf32>
    %cst_119 = arith.constant dense<0.000000e+00> : vector<8x8xf32>
    %270 = tpu.matmul %266, %269, %cst_119 {dimension_numbers = #tpu.dot_dimension_numbers<[1], [0], [0], [1], [0, 0, 1, 1], [], []>} : vector<8x16xf32>, vector<16x8xf32>, vector<8x8xf32> -> vector<8x8xf32>
    %cst_120 = arith.constant 2.500000e-01 : f32
    %271 = vector.broadcast %cst_120 : f32 to vector<8x8xf32>
    %272 = arith.mulf %270, %271 : vector<8x8xf32>
    %273 = vector.broadcast %265 : vector<1x8xf32> to vector<8x8xf32>
    %274 = arith.addf %272, %273 : vector<8x8xf32>
    %cst_121 = arith.constant dense<0xFF800000> : vector<8xf32>
    %275 = vector.multi_reduction <maximumf>, %274, %cst_121 [1] : vector<8x8xf32> to vector<8xf32>
    %276 = vector.shape_cast %275 : vector<8xf32> to vector<8x1xf32>
    %277 = vector.broadcast %276 : vector<8x1xf32> to vector<8x8xf32>
    %278 = arith.subf %274, %277 : vector<8x8xf32>
    %279 = math.exp %278 : vector<8x8xf32>
    %cst_122 = arith.constant dense<0.000000e+00> : vector<8xf32>
    %280 = vector.multi_reduction <add>, %279, %cst_122 [1] : vector<8x8xf32> to vector<8xf32>
    %281 = vector.shape_cast %280 : vector<8xf32> to vector<8x1xf32>
    %282 = tpu.reciprocal %281 {approx = true} : vector<8x1xf32> -> vector<8x1xf32>
    %283 = vector.broadcast %282 : vector<8x1xf32> to vector<8x8xf32>
    %284 = arith.mulf %279, %283 : vector<8x8xf32>
    %cst_123 = arith.constant dense<0.000000e+00> : vector<8x16xf32>
    %285 = tpu.matmul %284, %268, %cst_123 {dimension_numbers = #tpu.dot_dimension_numbers<[1], [0], [0], [1], [0, 0, 1, 1], [], []>} : vector<8x8xf32>, vector<8x16xf32>, vector<8x16xf32> -> vector<8x16xf32>
    %286 = vector.extract_strided_slice %209 {offsets = [0, 0], sizes = [16, 32], strides = [1, 1]} : vector<32x32xf32> to vector<16x32xf32>
    %cst_124 = arith.constant dense<0.000000e+00> : vector<8x32xf32>
    %287 = tpu.matmul %285, %286, %cst_124 {dimension_numbers = #tpu.dot_dimension_numbers<[1], [0], [0], [1], [0, 0, 1, 1], [], []>} : vector<8x16xf32>, vector<16x32xf32>, vector<8x32xf32> -> vector<8x32xf32>
    %288 = vector.extract_strided_slice %216 {offsets = [8, 16], sizes = [8, 16], strides = [1, 1]} : vector<16x96xf32> to vector<8x16xf32>
    %289 = vector.extract_strided_slice %216 {offsets = [8, 48], sizes = [8, 16], strides = [1, 1]} : vector<16x96xf32> to vector<8x16xf32>
    %290 = vector.extract_strided_slice %216 {offsets = [8, 80], sizes = [8, 16], strides = [1, 1]} : vector<16x96xf32> to vector<8x16xf32>
    %291 = tpu.transpose %289, [1, 0] : vector<8x16xf32> -> vector<16x8xf32>
    %cst_125 = arith.constant dense<0.000000e+00> : vector<8x8xf32>
    %292 = tpu.matmul %288, %291, %cst_125 {dimension_numbers = #tpu.dot_dimension_numbers<[1], [0], [0], [1], [0, 0, 1, 1], [], []>} : vector<8x16xf32>, vector<16x8xf32>, vector<8x8xf32> -> vector<8x8xf32>
    %cst_126 = arith.constant 2.500000e-01 : f32
    %293 = vector.broadcast %cst_126 : f32 to vector<8x8xf32>
    %294 = arith.mulf %292, %293 : vector<8x8xf32>
    %295 = vector.broadcast %265 : vector<1x8xf32> to vector<8x8xf32>
    %296 = arith.addf %294, %295 : vector<8x8xf32>
    %cst_127 = arith.constant dense<0xFF800000> : vector<8xf32>
    %297 = vector.multi_reduction <maximumf>, %296, %cst_127 [1] : vector<8x8xf32> to vector<8xf32>
    %298 = vector.shape_cast %297 : vector<8xf32> to vector<8x1xf32>
    %299 = vector.broadcast %298 : vector<8x1xf32> to vector<8x8xf32>
    %300 = arith.subf %296, %299 : vector<8x8xf32>
    %301 = math.exp %300 : vector<8x8xf32>
    %cst_128 = arith.constant dense<0.000000e+00> : vector<8xf32>
    %302 = vector.multi_reduction <add>, %301, %cst_128 [1] : vector<8x8xf32> to vector<8xf32>
    %303 = vector.shape_cast %302 : vector<8xf32> to vector<8x1xf32>
    %304 = tpu.reciprocal %303 {approx = true} : vector<8x1xf32> -> vector<8x1xf32>
    %305 = vector.broadcast %304 : vector<8x1xf32> to vector<8x8xf32>
    %306 = arith.mulf %301, %305 : vector<8x8xf32>
    %cst_129 = arith.constant dense<0.000000e+00> : vector<8x16xf32>
    %307 = tpu.matmul %306, %290, %cst_129 {dimension_numbers = #tpu.dot_dimension_numbers<[1], [0], [0], [1], [0, 0, 1, 1], [], []>} : vector<8x8xf32>, vector<8x16xf32>, vector<8x16xf32> -> vector<8x16xf32>
    %308 = vector.extract_strided_slice %209 {offsets = [16, 0], sizes = [16, 32], strides = [1, 1]} : vector<32x32xf32> to vector<16x32xf32>
    %cst_130 = arith.constant dense<0.000000e+00> : vector<8x32xf32>
    %309 = tpu.matmul %307, %308, %cst_130 {dimension_numbers = #tpu.dot_dimension_numbers<[1], [0], [0], [1], [0, 0, 1, 1], [], []>} : vector<8x16xf32>, vector<16x32xf32>, vector<8x32xf32> -> vector<8x32xf32>
    %310 = arith.addf %287, %309 : vector<8x32xf32>
    %311 = tpu.concatenate %263, %310 in 0 : vector<8x32xf32>, vector<8x32xf32> -> vector<16x32xf32>
    %c1_131 = arith.constant 1 : index
    %c0_132 = arith.constant 0 : index
    %c0_133 = arith.constant 0 : index
    %312 = vector.load %arg5[%c1_131, %c0_132, %c0_133] : memref<2x1x32xf32, #tpu.memory_space<vmem>>, vector<1x1x32xf32>
    %313 = vector.shape_cast %312 : vector<1x1x32xf32> to vector<1x32xf32>
    %314 = vector.broadcast %313 : vector<1x32xf32> to vector<16x32xf32>
    %315 = arith.addf %311, %314 : vector<16x32xf32>
    %316 = arith.addf %315, %207 : vector<16x32xf32>
    %c1_134 = arith.constant 1 : index
    %c0_135 = arith.constant 0 : index
    %c0_136 = arith.constant 0 : index
    %317 = vector.load %arg6[%c1_134, %c0_135, %c0_136] : memref<2x1x32xf32, #tpu.memory_space<vmem>>, vector<1x1x32xf32>
    %318 = vector.shape_cast %317 : vector<1x1x32xf32> to vector<1x32xf32>
    %c1_137 = arith.constant 1 : index
    %c0_138 = arith.constant 0 : index
    %c0_139 = arith.constant 0 : index
    %319 = vector.load %arg7[%c1_137, %c0_138, %c0_139] : memref<2x1x32xf32, #tpu.memory_space<vmem>>, vector<1x1x32xf32>
    %320 = vector.shape_cast %319 : vector<1x1x32xf32> to vector<1x32xf32>
    %cst_140 = arith.constant dense<0.000000e+00> : vector<16xf32>
    %321 = vector.multi_reduction <add>, %316, %cst_140 [1] : vector<16x32xf32> to vector<16xf32>
    %322 = vector.shape_cast %321 : vector<16xf32> to vector<16x1xf32>
    %cst_141 = arith.constant 3.200000e+01 : f32
    %323 = vector.broadcast %cst_141 : f32 to vector<16x1xf32>
    %324 = arith.divf %322, %323 : vector<16x1xf32>
    %325 = vector.broadcast %324 : vector<16x1xf32> to vector<16x32xf32>
    %326 = arith.subf %316, %325 : vector<16x32xf32>
    %327 = arith.mulf %326, %326 : vector<16x32xf32>
    %cst_142 = arith.constant dense<0.000000e+00> : vector<16xf32>
    %328 = vector.multi_reduction <add>, %327, %cst_142 [1] : vector<16x32xf32> to vector<16xf32>
    %329 = vector.shape_cast %328 : vector<16xf32> to vector<16x1xf32>
    %cst_143 = arith.constant 3.200000e+01 : f32
    %330 = vector.broadcast %cst_143 : f32 to vector<16x1xf32>
    %331 = arith.divf %329, %330 : vector<16x1xf32>
    %cst_144 = arith.constant 9.99999996E-13 : f32
    %332 = vector.broadcast %cst_144 : f32 to vector<16x1xf32>
    %333 = arith.addf %331, %332 : vector<16x1xf32>
    %334 = math.rsqrt %333 : vector<16x1xf32>
    %335 = vector.broadcast %334 : vector<16x1xf32> to vector<16x32xf32>
    %336 = arith.mulf %326, %335 : vector<16x32xf32>
    %337 = vector.broadcast %318 : vector<1x32xf32> to vector<16x32xf32>
    %338 = arith.mulf %336, %337 : vector<16x32xf32>
    %339 = vector.broadcast %320 : vector<1x32xf32> to vector<16x32xf32>
    %340 = arith.addf %338, %339 : vector<16x32xf32>
    %c1_145 = arith.constant 1 : index
    %c0_146 = arith.constant 0 : index
    %c0_147 = arith.constant 0 : index
    %341 = vector.load %arg8[%c1_145, %c0_146, %c0_147] : memref<2x32x64xf32, #tpu.memory_space<vmem>>, vector<1x32x64xf32>
    %342 = vector.shape_cast %341 : vector<1x32x64xf32> to vector<32x64xf32>
    %cst_148 = arith.constant dense<0.000000e+00> : vector<16x64xf32>
    %343 = tpu.matmul %340, %342, %cst_148 {dimension_numbers = #tpu.dot_dimension_numbers<[1], [0], [0], [1], [0, 0, 1, 1], [], []>} : vector<16x32xf32>, vector<32x64xf32>, vector<16x64xf32> -> vector<16x64xf32>
    %c1_149 = arith.constant 1 : index
    %c0_150 = arith.constant 0 : index
    %c0_151 = arith.constant 0 : index
    %344 = vector.load %arg9[%c1_149, %c0_150, %c0_151] : memref<2x1x64xf32, #tpu.memory_space<vmem>>, vector<1x1x64xf32>
    %345 = vector.shape_cast %344 : vector<1x1x64xf32> to vector<1x64xf32>
    %346 = vector.broadcast %345 : vector<1x64xf32> to vector<16x64xf32>
    %347 = arith.addf %343, %346 : vector<16x64xf32>
    %cst_152 = arith.constant 5.000000e-01 : f32
    %348 = vector.broadcast %cst_152 : f32 to vector<16x64xf32>
    %349 = arith.mulf %348, %347 : vector<16x64xf32>
    %cst_153 = arith.constant 4.471500e-02 : f32
    %350 = vector.broadcast %cst_153 : f32 to vector<16x64xf32>
    %351 = arith.mulf %350, %347 : vector<16x64xf32>
    %352 = arith.mulf %351, %347 : vector<16x64xf32>
    %353 = arith.mulf %352, %347 : vector<16x64xf32>
    %354 = arith.addf %347, %353 : vector<16x64xf32>
    %cst_154 = arith.constant 0.797884583 : f32
    %355 = vector.broadcast %cst_154 : f32 to vector<16x64xf32>
    %356 = arith.mulf %355, %354 : vector<16x64xf32>
    %357 = math.tanh %356 : vector<16x64xf32>
    %cst_155 = arith.constant 1.000000e+00 : f32
    %358 = vector.broadcast %cst_155 : f32 to vector<16x64xf32>
    %359 = arith.addf %358, %357 : vector<16x64xf32>
    %360 = arith.mulf %349, %359 : vector<16x64xf32>
    %c1_156 = arith.constant 1 : index
    %c0_157 = arith.constant 0 : index
    %c0_158 = arith.constant 0 : index
    %361 = vector.load %arg10[%c1_156, %c0_157, %c0_158] : memref<2x64x32xf32, #tpu.memory_space<vmem>>, vector<1x64x32xf32>
    %362 = vector.shape_cast %361 : vector<1x64x32xf32> to vector<64x32xf32>
    %cst_159 = arith.constant dense<0.000000e+00> : vector<16x32xf32>
    %363 = tpu.matmul %360, %362, %cst_159 {dimension_numbers = #tpu.dot_dimension_numbers<[1], [0], [0], [1], [0, 0, 1, 1], [], []>} : vector<16x64xf32>, vector<64x32xf32>, vector<16x32xf32> -> vector<16x32xf32>
    %c1_160 = arith.constant 1 : index
    %c0_161 = arith.constant 0 : index
    %c0_162 = arith.constant 0 : index
    %364 = vector.load %arg11[%c1_160, %c0_161, %c0_162] : memref<2x1x32xf32, #tpu.memory_space<vmem>>, vector<1x1x32xf32>
    %365 = vector.shape_cast %364 : vector<1x1x32xf32> to vector<1x32xf32>
    %366 = vector.broadcast %365 : vector<1x32xf32> to vector<16x32xf32>
    %367 = arith.addf %363, %366 : vector<16x32xf32>
    %368 = arith.addf %367, %340 : vector<16x32xf32>
    %c1_163 = arith.constant 1 : index
    %c0_164 = arith.constant 0 : index
    %c0_165 = arith.constant 0 : index
    %369 = vector.load %arg12[%c1_163, %c0_164, %c0_165] : memref<2x1x32xf32, #tpu.memory_space<vmem>>, vector<1x1x32xf32>
    %370 = vector.shape_cast %369 : vector<1x1x32xf32> to vector<1x32xf32>
    %c1_166 = arith.constant 1 : index
    %c0_167 = arith.constant 0 : index
    %c0_168 = arith.constant 0 : index
    %371 = vector.load %arg13[%c1_166, %c0_167, %c0_168] : memref<2x1x32xf32, #tpu.memory_space<vmem>>, vector<1x1x32xf32>
    %372 = vector.shape_cast %371 : vector<1x1x32xf32> to vector<1x32xf32>
    %cst_169 = arith.constant dense<0.000000e+00> : vector<16xf32>
    %373 = vector.multi_reduction <add>, %368, %cst_169 [1] : vector<16x32xf32> to vector<16xf32>
    %374 = vector.shape_cast %373 : vector<16xf32> to vector<16x1xf32>
    %cst_170 = arith.constant 3.200000e+01 : f32
    %375 = vector.broadcast %cst_170 : f32 to vector<16x1xf32>
    %376 = arith.divf %374, %375 : vector<16x1xf32>
    %377 = vector.broadcast %376 : vector<16x1xf32> to vector<16x32xf32>
    %378 = arith.subf %368, %377 : vector<16x32xf32>
    %379 = arith.mulf %378, %378 : vector<16x32xf32>
    %cst_171 = arith.constant dense<0.000000e+00> : vector<16xf32>
    %380 = vector.multi_reduction <add>, %379, %cst_171 [1] : vector<16x32xf32> to vector<16xf32>
    %381 = vector.shape_cast %380 : vector<16xf32> to vector<16x1xf32>
    %cst_172 = arith.constant 3.200000e+01 : f32
    %382 = vector.broadcast %cst_172 : f32 to vector<16x1xf32>
    %383 = arith.divf %381, %382 : vector<16x1xf32>
    %cst_173 = arith.constant 9.99999996E-13 : f32
    %384 = vector.broadcast %cst_173 : f32 to vector<16x1xf32>
    %385 = arith.addf %383, %384 : vector<16x1xf32>
    %386 = math.rsqrt %385 : vector<16x1xf32>
    %387 = vector.broadcast %386 : vector<16x1xf32> to vector<16x32xf32>
    %388 = arith.mulf %378, %387 : vector<16x32xf32>
    %389 = vector.broadcast %370 : vector<1x32xf32> to vector<16x32xf32>
    %390 = arith.mulf %388, %389 : vector<16x32xf32>
    %391 = vector.broadcast %372 : vector<1x32xf32> to vector<16x32xf32>
    %392 = arith.addf %390, %391 : vector<16x32xf32>
    %c0_174 = arith.constant 0 : index
    %c0_175 = arith.constant 0 : index
    %393 = vector.load %arg16[%c0_174, %c0_175] : memref<32x32xf32, #tpu.memory_space<vmem>>, vector<32x32xf32>
    %cst_176 = arith.constant dense<0.000000e+00> : vector<16x32xf32>
    %394 = tpu.matmul %392, %393, %cst_176 {dimension_numbers = #tpu.dot_dimension_numbers<[1], [0], [0], [1], [0, 0, 1, 1], [], []>} : vector<16x32xf32>, vector<32x32xf32>, vector<16x32xf32> -> vector<16x32xf32>
    %c0_177 = arith.constant 0 : index
    %c0_178 = arith.constant 0 : index
    %395 = vector.load %arg17[%c0_177, %c0_178] : memref<1x32xf32, #tpu.memory_space<vmem>>, vector<1x32xf32>
    %396 = vector.broadcast %395 : vector<1x32xf32> to vector<16x32xf32>
    %397 = arith.addf %394, %396 : vector<16x32xf32>
    %398 = math.tanh %397 : vector<16x32xf32>
    %c0_179 = arith.constant 0 : index
    %c0_180 = arith.constant 0 : index
    %399 = vector.load %arg18[%c0_179, %c0_180] : memref<32x4xf32, #tpu.memory_space<vmem>>, vector<32x4xf32>
    %cst_181 = arith.constant dense<0.000000e+00> : vector<16x4xf32>
    %400 = tpu.matmul %398, %399, %cst_181 {dimension_numbers = #tpu.dot_dimension_numbers<[1], [0], [0], [1], [0, 0, 1, 1], [], []>} : vector<16x32xf32>, vector<32x4xf32>, vector<16x4xf32> -> vector<16x4xf32>
    %c0_182 = arith.constant 0 : index
    %c0_183 = arith.constant 0 : index
    %401 = vector.load %arg19[%c0_182, %c0_183] : memref<1x4xf32, #tpu.memory_space<vmem>>, vector<1x4xf32>
    %402 = vector.broadcast %401 : vector<1x4xf32> to vector<16x4xf32>
    %403 = arith.addf %400, %402 : vector<16x4xf32>
    %c0_184 = arith.constant 0 : index
    %c0_185 = arith.constant 0 : index
    %404 = vector.load %arg20[%c0_184, %c0_185] : memref<16x4xf32, #tpu.memory_space<vmem>>, vector<16x4xf32>
    tpu.vector_store %arg20[%c0_184, %c0_185], %403 {strides = array<i32>} : memref<16x4xf32, #tpu.memory_space<vmem>>, vector<16x4xf32>,
    return
  }
}

</mosaic_0001>

<bundles_post_ra>
// kernel: bert_classifier_forward.1
= control target key start
LH: loop header
LB: loop body
LE: loop exit
PB: predicated region body
PF: predicated region fallthrough
CT: control target
= control target key end

     0   :  { %vm69_vm0 = vcmask 261120   ;;  %v3685_v36 = vmov 0.0   ;;  %vm3686_vm1 = vmmov 0   ;;  %s3687_s28 = smov 96   ;;  %vm213_vm2 = vcmask 130048   ;;  %s3690_s21 = smov 112   ;;  %s4256_s0 = inlined_call_operand.vmem [shape: f32[16,32], index: 0, kind: input, shape index: {}]   ;;  %s4257_s2 = inlined_call_operand.vmem [shape: f32[2,32,96], index: 2, kind: input, shape index: {}]   ;;  %s4258_s14 = inlined_call_operand.vmem [shape: f32[1,32], index: 14, kind: input, shape index: {}]   ;;  %s4259_s15 = inlined_call_operand.vmem [shape: f32[1,32], index: 15, kind: input, shape index: {}]   ;;  %s4260_s3 = inlined_call_operand.vmem [shape: f32[2,1,96], index: 3, kind: input, shape index: {}]   ;;  %s4261_s1 = inlined_call_operand.vmem [shape: f32[2,1,8], index: 1, kind: input, shape index: {}]   ;;  %s4262_s4 = inlined_call_operand.vmem [shape: f32[2,32,32], index: 4, kind: input, shape index: {}]   ;;  %s4263_s5 = inlined_call_operand.vmem [shape: f32[2,1,32], index: 5, kind: input, shape index: {}]   ;;  %s4264_s6 = inlined_call_operand.vmem [shape: f32[2,1,32], index: 6, kind: input, shape index: {}]   ;;  %s4265_s7 = inlined_call_operand.vmem [shape: f32[2,1,32], index: 7, kind: input, shape index: {}]   ;;  %s4266_s8 = inlined_call_operand.vmem [shape: f32[2,32,64], index: 8, kind: input, shape index: {}]   ;;  %s4267_s10 = inlined_call_operand.vmem [shape: f32[2,64,32], index: 10, kind: input, shape index: {}]   ;;  %s4268_s9 = inlined_call_operand.vmem [shape: f32[2,1,64], index: 9, kind: input, shape index: {}]   ;;  %s4269_s11 = inlined_call_operand.vmem [shape: f32[2,1,32], index: 11, kind: input, shape index: {}]   ;;  %s4270_s12 = inlined_call_operand.vmem [shape: f32[2,1,32], index: 12, kind: input, shape index: {}]   ;;  %s4271_s13 = inlined_call_operand.vmem [shape: f32[2,1,32], index: 13, kind: input, shape index: {}]   ;;  %s4272_s16 = inlined_call_operand.vmem [shape: f32[32,32], index: 16, kind: input, shape index: {}]   ;;  %s4273_s18 = inlined_call_operand.vmem [shape: f32[32,4], index: 18, kind: input, shape index: {}]   ;;  %s4274_s17 = inlined_call_operand.vmem [shape: f32[1,32], index: 17, kind: input, shape index: {}]   ;;  %s4275_s19 = inlined_call_operand.vmem [shape: f32[1,4], index: 19, kind: input, shape index: {}]   ;;  %s4276_s20 = inlined_call_operand.vmem [shape: f32[16,4], index: 20, kind: output, shape index: {}]  }
   0x1   :  { %4282 = sst [smem:[#allocation2_spill]] %s4256_s0  ;;  %3280 = vmatprep.subr.mxu1 %v3685_v36  ;;  %3282 = vmatprep.mubr.msk.f32.mxu1 %vm3686_vm1, %v3685_v36  ;;  %v3854_v44 = vld [vmem:[%s4261_s1] ss:$0 sm:$0xff]  ;;  %vm296_vm3 = vcmask 64512   ;;  %s3689_s0 = smov 64   ;;  %vm1364_vm4 = vcmask 523264  }
   0x2   :  { %4283 = sst [smem:[#allocation3_spill]] %s4257_s2  ;;  %s4287_s23 = sld [smem:[#allocation2_spill]]  ;;  %vm3051_vm5 = vcmask 31744  }
   0x3   :  { %4284 = sst [smem:[#allocation4_spill]] %s4258_s14  ;;  %s4288_s26 = sld [smem:[#allocation3_spill]] }
   0x4   :  { %4285 = sst [smem:[#allocation5_spill]] %s4259_s15  ;;  %s4289_s22 = sld [smem:[#allocation4_spill]] }
   0x5   :  { %4286 = sst [smem:[#allocation6_spill]] %s4260_s3  ;;  %s4290_s14 = sld [smem:[#allocation5_spill]] }
   0x6   :  { %s4291_s27 = sld [smem:[#allocation6_spill]]  ;;  %s3688_s3 = smov 80  }
   0x7   :  { %s4280_s2 = smov 48  }
   0x8   :  { %v65_v0 = vld [vmem:[%s4287_s23] sm:$0xff]  ;;  %v66_v1 = vld [vmem:[%s4287_s23 + $0x8] sm:$0xff] }
   0x9   :  { %v70_v2 = vsel %vm69_vm0, %v65_v0, 0.0  ;;  %v73_v3 = vsel %vm69_vm0, %v66_v1, 0.0  ;;  %v117_v14 = vld [vmem:[%s4288_s26] sm:$0xff]  ;;  %v118_v15 = vld [vmem:[%s4288_s26 + $0x8] sm:$0xff]  ;;  %v119_v16 = vld [vmem:[%s4288_s26 + $0x10] sm:$0xff] }
   0xa   :  { %71 = vadd.xlane.f32.xlu0 %v70_v2  ;;  %v3509_v17 = vpack.c.bf16 %v118_v15, %v117_v14  ;;  %v120_v18 = vld [vmem:[%s4288_s26 + $0x18] sm:$0xff]  ;;  %v3058_v27 = vld [vmem:[%s4289_s22] ss:$0 sm:$0xff]  ;;  %v114_v15 = vld [vmem:[%s4262_s4 + $0x8] sm:$0xff] }
   0xb   :  { %v3513_v19 = vpack.c.bf16 %v120_v18, %v119_v16  ;;  %v3059_v29 = vld [vmem:[%s4290_s14] ss:$0 sm:$0xff] }
   0xc   :  { %3510 = vmatprep.subr.bf16.mxu0 %v3509_v17  ;;  %v3060_v37 = vld [vmem:[%s4291_s27] ss:$0 sm:$0xff] }
   0xd   :  { %3512 = vmatpush3.bf16.msra.mxu0 %v3509_v17  ;;  %v113_v14 = vld [vmem:[%s4262_s4] sm:$0xff] }
   0xe   :  { %74 = vadd.xlane.f32.xlu0 %v73_v3  ;;  %3514 = vmatprep.subr.bf16.mxu0 %v3513_v19  ;;  %v3895_v17 = vpack.c.bf16 %v114_v15, %v113_v14 }
  0x11   :  { %3516 = vmatpush3.bf16.msra.mxu0 %v3513_v19 }
  0x97   :  { %v72_v4 = vpop.xlane.xlu0 %71 }
  0x98   :  { %v77_v5 = vmul.f32 0.03125, %v72_v4 }
  0x9a   :  { %v79_v6 = vsub.f32 %v65_v0, %v77_v5 }
  0x9b   :  { %v75_v7 = vpop.xlane.xlu0 %74 }
  0x9c   :  { %v78_v8 = vmul.f32 0.03125, %v75_v7  ;;  %v81_v9 = vmul.f32 %v79_v6, %v79_v6 }
  0x9e   :  { %v80_v10 = vsub.f32 %v66_v1, %v78_v8  ;;  %v83_v11 = vsel %vm69_vm0, %v81_v9, 0.0  ;;  %v3692_v9 = vmov 0.0|0.0  }
  0x9f   :  { %84 = vadd.xlane.f32.xlu1 %v83_v11  ;;  %3517 = vmatprep.subr.bf16.mxu0 %v3692_v9  ;;  %v116_v11 = vld [vmem:[%s4262_s4 + $0x18] sm:$0xff] }
  0xa0   :  { %v82_v12 = vmul.f32 %v80_v10, %v80_v10 }
  0xa2   :  { %v86_v13 = vsel %vm69_vm0, %v82_v12, 0.0 }
  0xa3   :  { %87 = vadd.xlane.f32.xlu1 %v86_v13 }
 0x12c   :  { %v85_v20 = vpop.xlane.xlu1 %84 }
 0x12d   :  { %v89_v21 = vmul.f32 0.03125, %v85_v20 }
 0x12f   :  { %v91_v22 = vadd.f32 1e-12, %v89_v21 }
 0x130   :  { %v88_v23 = vpop.xlane.xlu1 %87 }
 0x131   :  { %3621 = vrsqrt.f32 %v91_v22  ;;  %v90_v24 = vmul.f32 0.03125, %v88_v23 }
 0x133   :  { %v92_v25 = vadd.f32 1e-12, %v90_v24 }
 0x135   :  { %3623 = vrsqrt.f32 %v92_v25 }
 0x13b   :  { %v3622_v26 = vpop.eup %3621 }
 0x13c   :  { %v95_v28 = vmul.f32 %v3622_v26, %v79_v6 }
 0x13e   :  { %v103_v30 = vmul.f32 %v3058_v27, %v95_v28 }
 0x13f   :  { %v3624_v31 = vpop.eup %3623 }
 0x140   :  { %v96_v32 = vmul.f32 %v3624_v31, %v80_v10  ;;  %v3826_v33 = vadd.f32 %v3059_v29, %v103_v30  ;;  %v115_v10 = vld [vmem:[%s4262_s4 + $0x10] sm:$0xff]  ;;  %v3922_v30 = vld [vmem:[%s4261_s1 + $0x1] ss:$0 sm:$0xff] }
 0x141   :  { %v3518_v12 = vpack.c.bf16 %v116_v11, %v115_v10 }
 0x142   :  { %v104_v34 = vmul.f32 %v3058_v27, %v96_v32  ;;  %3277 = vmatprep.mubr.msk.f32.mxu0 %vm69_vm0, %v3826_v33 }
 0x144   :  { %v3830_v35 = vadd.f32 %v3059_v29, %v104_v34 }
 0x146   :  { %3278 = vmatmul.mubr.msk.f32.vlgmr.msra.gmra.mrb[0].mxu0 %vm69_vm0, %v3830_v35 }
 0x147   :  { %3304 = vmatprep.mubr.msk.f32.mxu0 %vm3686_vm1, %v3685_v36  ;;  %3519 = vmatpush3.bf16.msra.mxu0 %v3518_v12 }
 0x148   :  { %3314 = vmatprep.subr.mxu0 %v3685_v36 }
 0x219   :  { %v3279_v38 = vpop.f32.mrb[0].mxu0 }
 0x21a   :  { %v3842_v39 = vadd.f32 %v3279_v38, %v3060_v37  ;;  %v200_v40 = vpop.f32.mrb[1].mxu0 }
 0x21b   :  { %v201_v41 = vadd.f32 %v3060_v37, %v200_v40 }
 0x21d   :  { %211 = vrot.lane.b32.xlu0 %v201_v41, %s3687_s28 }
 0x221   :  { %386 = vrot.lane.b32.xlu0 %v201_v41, %s3688_s3 }
 0x28f   :  { %v212_v42 = vpop.permute.xlu0 %211 }
 0x290   :  { %3281 = vmatpush3.xpose.msk.msra.mxu1 %vm213_vm2, %v212_v42 }
 0x291   :  { %3285 = vmatprep.subr.mxu1 %v3685_v36 }
 0x293   :  { %3283 = vmatmul.mubr.msk.f32.vlgmr.msra.gmra.mrb[0].mxu1 %vm213_vm2, %v201_v41  ;;  %v387_v58 = vpop.permute.xlu0 %386 }
 0x294   :  { %3287 = vmatprep.mubr.msk.f32.mxu1 %vm3686_vm1, %v3685_v36 }
 0x366   :  { %v284_v43 = vpop.f32.mrb[0].mxu1 }
 0x367   :  { %v288_v45 = vmul.f32 0.25, %v284_v43  ;;  %v3284_v46 = vpop.f32.mrb[1].mxu1 }
 0x369   :  { %v295_v47 = vadd.f32 %v3854_v44, %v288_v45  ;;  %v3082_v45 = vld [vmem:[%s4263_s5] ss:$0 sm:$0xff] }
 0x36b   :  { %v297_v48 = vsel %vm296_vm3, %v295_v47, -inf }
 0x36c   :  { %298 = vmax.xlane.f32.xlu1 %v297_v48 }
 0x37d   :  { %308 = vrot.lane.b32.xlu1 %v201_v41, %s3689_s0 }
 0x3f9   :  { %v299_v49 = vpop.xlane.xlu1 %298 }
 0x3fa   :  { %v300_v50 = vsub.f32 %v295_v47, %v299_v49 }
 0x3fc   :  { %v301_v51 = vmul.f32 1.442695, %v300_v50 }
 0x3fd   :  { %v309_v52 = vpop.permute.xlu1 %308 }
 0x3fe   :  { %3625 = vpow2.f32 %v301_v51  ;;  %3286 = vmatpush3.msra.mxu1 %v309_v52 }
 0x3ff   :  { %3290 = vmatprep.subr.mxu1 %v3685_v36 }
 0x408   :  { %v3626_v53 = vpop.eup %3625 }
 0x409   :  { %v303_v54 = vsel %vm296_vm3, %v3626_v53, 0.0 }
 0x40a   :  { %304 = vadd.xlane.f32.xlu1 %v303_v54 }
 0x41b   :  { %384 = vrot.lane.b32.xlu1 %v201_v41, %s3690_s21 }
 0x497   :  { %v305_v55 = vpop.xlane.xlu1 %304 }
 0x498   :  { %3627 = vrcp.f32 %v305_v55 }
 0x49b   :  { %v385_v59 = vpop.permute.xlu1 %384 }
 0x4a2   :  { %v3628_v56 = vpop.eup %3627 }
 0x4a3   :  { %v307_v57 = vmul.f32 %v3628_v56, %v3626_v53 }
 0x4a5   :  { %3288 = vmatmul.mubr.msk.f32.vlgmr.msra.gmra.mrb[2].mxu1 %vm296_vm3, %v307_v57 }
 0x4a6   :  { %3291 = vmatpush3.xpose.msk.msra.mxu1 %vm213_vm2, %v387_v58  ;;  %3292 = vmatprep.mubr.msk.f32.mxu1 %vm3686_vm1, %v3685_v36 }
 0x4a7   :  { %3295 = vmatprep.subr.mxu1 %v3685_v36 }
 0x4a9   :  { %3293 = vmatmul.mubr.msk.f32.vlgmr.msra.gmra.mrb[4].mxu1 %vm213_vm2, %v385_v59 }
 0x4aa   :  { %3297 = vmatprep.mubr.msk.f32.mxu1 %vm3686_vm1, %v3685_v36 }
 0x578   :  { %v380_v60 = vpop.f32.mrb[2].mxu1 }
 0x579   :  { %v3289_v61 = vpop.f32.mrb[3].mxu1 }
 0x57c   :  { %v458_v62 = vpop.f32.mrb[4].mxu1 }
 0x57d   :  { %v462_v63 = vmul.f32 0.25, %v458_v62  ;;  %v3294_v0 = vpop.f32.mrb[5].mxu1 }
 0x57f   :  { %v463_v1 = vadd.f32 %v3854_v44, %v462_v63 }
 0x581   :  { %v464_v2 = vsel %vm296_vm3, %v463_v1, -inf }
 0x582   :  { %465 = vmax.xlane.f32.xlu0 %v464_v2 }
 0x598   :  { %475 = vrot.lane.b32.xlu0 %v201_v41, %s4280_s2 }
 0x59c   :  { %873 = vrot.lane.b32.xlu0 %v3842_v39, %s3688_s3 }
 0x60f   :  { %v466_v3 = vpop.xlane.xlu0 %465 }
 0x610   :  { %v467_v4 = vsub.f32 %v463_v1, %v466_v3 }
 0x612   :  { %v468_v5 = vmul.f32 1.442695, %v467_v4 }
 0x613   :  { %v476_v6 = vpop.permute.xlu0 %475 }
 0x614   :  { %3629 = vpow2.f32 %v468_v5  ;;  %3296 = vmatpush3.msra.mxu1 %v476_v6 }
 0x615   :  { %3520 = vmatprep.subr.bf16.mxu1 %v3692_v9 }
 0x617   :  { %v874_v23 = vpop.permute.xlu0 %873 }
 0x61e   :  { %v3630_v7 = vpop.eup %3629 }
 0x61f   :  { %v470_v8 = vsel %vm296_vm3, %v3630_v7, 0.0 }
 0x620   :  { %471 = vadd.xlane.f32.xlu1 %v470_v8 }
 0x631   :  { %700 = vrot.lane.b32.xlu1 %v3842_v39, %s3687_s28 }
 0x635   :  { %871 = vrot.lane.b32.xlu1 %v3842_v39, %s3690_s21 }
 0x6ad   :  { %v472_v13 = vpop.xlane.xlu1 %471 }
 0x6ae   :  { %3631 = vrcp.f32 %v472_v13 }
 0x6b1   :  { %v701_v20 = vpop.permute.xlu1 %700 }
 0x6b5   :  { %v872_v25 = vpop.permute.xlu1 %871 }
 0x6b8   :  { %v3632_v16 = vpop.eup %3631 }
 0x6b9   :  { %v474_v18 = vmul.f32 %v3632_v16, %v3630_v7 }
 0x6bb   :  { %3298 = vmatmul.mubr.msk.f32.vlgmr.msra.gmra.mrb[6].mxu1 %vm296_vm3, %v474_v18 }
 0x6bc   :  { %3522 = vmatpush3.bf16.msra.mxu1 %v3895_v17  ;;  %3311 = vmatprep.mubr.msk.f32.mxu1 %vm3686_vm1, %v3685_v36 }
 0x6bd   :  { %3319 = vmatprep.subr.mxu1 %v3685_v36 }
 0x6bf   :  { %3312 = vmatmul.mubr.msk.f32.vlgmr.msra.gmra.mrb[8].mxu1 %vm213_vm2, %v380_v60 }
 0x6c0   :  { %3321 = vmatprep.mubr.msk.f32.mxu1 %vm3686_vm1, %v3685_v36 }
 0x78e   :  { %v547_v19 = vpop.f32.mrb[6].mxu1 }
 0x78f   :  { %v3299_v21 = vpop.f32.mrb[7].mxu1  ;;  %3305 = vmatmul.mubr.msk.f32.vlgmr.msra.gmra.mrb[2].mxu0 %vm213_vm2, %v547_v19 }
 0x790   :  { %3315 = vmatpush3.xpose.msk.msra.mxu0 %vm213_vm2, %v701_v20  ;;  %3316 = vmatprep.mubr.msk.f32.mxu0 %vm3686_vm1, %v3685_v36 }
 0x791   :  { %3324 = vmatprep.subr.mxu0 %v3685_v36 }
 0x792   :  { %v693_v22 = vpop.f32.mrb[8].mxu1 }
 0x793   :  { %v3313_v24 = vpop.f32.mrb[9].mxu1  ;;  %3317 = vmatmul.mubr.msk.f32.vlgmr.msra.gmra.mrb[4].mxu0 %vm213_vm2, %v3842_v39 }
 0x794   :  { %3325 = vmatpush3.xpose.msk.msra.mxu0 %vm213_vm2, %v874_v23  ;;  %3326 = vmatprep.mubr.msk.f32.mxu0 %vm3686_vm1, %v3685_v36 }
 0x795   :  { %3523 = vmatprep.subr.bf16.mxu0 %v3692_v9 }
 0x797   :  { %3327 = vmatmul.mubr.msk.f32.vlgmr.msra.gmra.mrb[6].mxu0 %vm213_vm2, %v872_v25 }
 0x798   :  { %3525 = vmatpush3.bf16.msra.mxu0 %v3518_v12  ;;  %3338 = vmatprep.mubr.msk.f32.mxu0 %vm3686_vm1, %v3685_v36 }
 0x862   :  { %v620_v26 = vpop.f32.mrb[2].mxu0 }
 0x863   :  { %v694_v27 = vadd.f32 %v693_v22, %v620_v26  ;;  %v3306_v28 = vpop.f32.mrb[3].mxu0 }
 0x865   :  { %v1191_v46 = vadd.f32 %v3082_v45, %v694_v27 }
 0x866   :  { %v772_v29 = vpop.f32.mrb[4].mxu0 }
 0x867   :  { %v776_v31 = vmul.f32 0.25, %v772_v29  ;;  %v3318_v32 = vpop.f32.mrb[5].mxu0  ;;  %v1193_v47 = vadd.f32 %v1191_v46, %v3826_v33  ;;  %v3084_v29 = vld [vmem:[%s4265_s7] ss:$0 sm:$0xff] }
 0x869   :  { %v783_v34 = vadd.f32 %v3922_v30, %v776_v31  ;;  %v1197_v48 = vsel %vm69_vm0, %v1193_v47, 0.0 }
 0x86a   :  { %v945_v37 = vpop.f32.mrb[6].mxu0 }
 0x86b   :  { %v949_v38 = vmul.f32 0.25, %v945_v37  ;;  %v3328_v40 = vpop.f32.mrb[7].mxu0  ;;  %v784_v41 = vsel %vm296_vm3, %v783_v34, -inf  ;;  %v1240_v37 = vld [vmem:[%s4266_s8 + $0x8] sm:$0xff] }
 0x86c   :  { %785 = vmax.xlane.f32.xlu0 %v784_v41  ;;  %v1241_v40 = vld [vmem:[%s4266_s8 + $0x10] sm:$0xff]  ;;  %v1242_v41 = vld [vmem:[%s4266_s8 + $0x18] sm:$0xff] }
 0x86d   :  { %v950_v42 = vadd.f32 %v3922_v30, %v949_v38 }
 0x86f   :  { %v951_v43 = vsel %vm296_vm3, %v950_v42, -inf }
 0x870   :  { %952 = vmax.xlane.f32.xlu1 %v951_v43 }
 0x881   :  { %962 = vrot.lane.b32.xlu1 %v3842_v39, %s4280_s2 }
 0x8a5   :  { %1198 = vadd.xlane.f32.xlu1 %v1197_v48 }
 0x8f9   :  { %v786_v49 = vpop.xlane.xlu0 %785 }
 0x8fa   :  { %v787_v50 = vsub.f32 %v783_v34, %v786_v49  ;;  %v1239_v34 = vld [vmem:[%s4266_s8] sm:$0xff] }
 0x8fb   :  { %v3529_v38 = vpack.c.bf16 %v1240_v37, %v1239_v34 }
 0x8fc   :  { %v788_v51 = vmul.f32 1.442695, %v787_v50 }
 0x8fd   :  { %v953_v52 = vpop.xlane.xlu1 %952  ;;  %3530 = vmatprep.subr.bf16.mxu0 %v3529_v38 }
 0x8fe   :  { %3633 = vpow2.f32 %v788_v51  ;;  %v954_v53 = vsub.f32 %v950_v42, %v953_v52  ;;  %v3533_v42 = vpack.c.bf16 %v1242_v41, %v1241_v40  ;;  %v1349_v51 = vld [vmem:[%s4267_s10] sm:$0xff]  ;;  %v1350_v52 = vld [vmem:[%s4267_s10 + $0x8] sm:$0xff] }
 0x900   :  { %v955_v54 = vmul.f32 1.442695, %v954_v53  ;;  %v3537_v53 = vpack.c.bf16 %v1350_v52, %v1349_v51 }
 0x901   :  { %v963_v63 = vpop.permute.xlu1 %962 }
 0x902   :  { %3635 = vpow2.f32 %v955_v54  ;;  %v1351_v54 = vld [vmem:[%s4267_s10 + $0x10] sm:$0xff] }
 0x908   :  { %v3634_v55 = vpop.eup %3633 }
 0x909   :  { %v790_v56 = vsel %vm296_vm3, %v3634_v55, 0.0 }
 0x90a   :  { %791 = vadd.xlane.f32.xlu0 %v790_v56 }
 0x90c   :  { %v3636_v57 = vpop.eup %3635 }
 0x90d   :  { %v957_v58 = vsel %vm296_vm3, %v3636_v57, 0.0 }
 0x90e   :  { %958 = vadd.xlane.f32.xlu0 %v957_v58  ;;  %v1354_v58 = vld [vmem:[%s4267_s10 + $0x28] sm:$0xff] }
 0x924   :  { %795 = vrot.lane.b32.xlu0 %v3842_v39, %s3689_s0 }
 0x932   :  { %v1199_v5 = vpop.xlane.xlu1 %1198 }
 0x933   :  { %v1203_v8 = vmul.f32 0.03125, %v1199_v5 }
 0x935   :  { %v1205_v13 = vsub.f32 %v1193_v47, %v1203_v8 }
 0x997   :  { %v792_v33 = vpop.xlane.xlu0 %791 }
 0x998   :  { %3637 = vrcp.f32 %v792_v33 }
 0x99b   :  { %v959_v59 = vpop.xlane.xlu0 %958 }
 0x99c   :  { %3639 = vrcp.f32 %v959_v59  ;;  %v1355_v59 = vld [vmem:[%s4267_s10 + $0x30] sm:$0xff] }
 0x99f   :  { %v796_v60 = vpop.permute.xlu0 %795 }
 0x9a0   :  { %3320 = vmatpush3.msra.mxu1 %v796_v60  ;;  %v1356_v60 = vld [vmem:[%s4267_s10 + $0x38] sm:$0xff] }
 0x9a1   :  { %3329 = vmatprep.subr.mxu1 %v3685_v36 }
 0x9a2   :  { %v3638_v61 = vpop.eup %3637 }
 0x9a3   :  { %v794_v62 = vmul.f32 %v3638_v61, %v3634_v55  ;;  %v1352_v55 = vld [vmem:[%s4267_s10 + $0x18] sm:$0xff]  ;;  %v3549_v61 = vpack.c.bf16 %v1356_v60, %v1355_v59 }
 0x9a4   :  { %v3541_v56 = vpack.c.bf16 %v1352_v55, %v1351_v54 }
 0x9a5   :  { %3322 = vmatmul.mubr.msk.f32.vlgmr.msra.gmra.mrb[10].mxu1 %vm296_vm3, %v794_v62  ;;  %v3085_v62 = vld [vmem:[%s4268_s9] ss:$0 sm:$0xff] }
 0x9a6   :  { %v3640_v0 = vpop.eup %3639  ;;  %3330 = vmatpush3.msra.mxu1 %v963_v63  ;;  %3331 = vmatprep.mubr.msk.f32.mxu1 %vm3686_vm1, %v3685_v36 }
 0x9a7   :  { %v961_v1 = vmul.f32 %v3640_v0, %v3636_v57  ;;  %3526 = vmatprep.subr.bf16.mxu1 %v3692_v9  ;;  %v1353_v57 = vld [vmem:[%s4267_s10 + $0x20] sm:$0xff] }
 0x9a8   :  { %v3545_v33 = vpack.c.bf16 %v1354_v58, %v1353_v57  ;;  %v3091_v58 = vld [vmem:[%s4270_s12] ss:$0 sm:$0xff] }
 0x9a9   :  { %3332 = vmatmul.mubr.msk.f32.vlgmr.msra.gmra.mrb[12].mxu1 %vm296_vm3, %v961_v1 }
 0x9aa   :  { %3528 = vmatpush3.bf16.msra.mxu1 %v3895_v17  ;;  %3345 = vmatprep.mubr.msk.f32.mxu1 %vm3686_vm1, %v3685_v36  ;;  %v1207_v17 = vmul.f32 %v1205_v13, %v1205_v13 }
 0x9ab   :  { %3538 = vmatprep.subr.bf16.mxu1 %v3537_v53 }
 0x9ac   :  { %v1209_v18 = vsel %vm69_vm0, %v1207_v17, 0.0 }
 0xa78   :  { %v867_v39 = vpop.f32.mrb[10].mxu1 }
 0xa79   :  { %v3323_v2 = vpop.f32.mrb[11].mxu1  ;;  %3346 = vmatmul.mubr.msk.f32.vlgmr.msra.gmra.mrb[14].mxu1 %vm213_vm2, %v867_v39 }
 0xa7a   :  { %3540 = vmatpush3.bf16.msra.mxu1 %v3537_v53 }
 0xa7b   :  { %3542 = vmatprep.subr.bf16.mxu1 %v3541_v56 }
 0xa7c   :  { %v1034_v3 = vpop.f32.mrb[12].mxu1 }
 0xa7d   :  { %v3333_v4 = vpop.f32.mrb[13].mxu1  ;;  %3339 = vmatmul.mubr.msk.f32.vlgmr.msra.gmra.mrb[8].mxu0 %vm213_vm2, %v1034_v3 }
 0xa7e   :  { %3532 = vmatpush3.bf16.msra.mxu0 %v3529_v38  ;;  %3544 = vmatpush3.bf16.msra.mxu1 %v3541_v56 }
 0xa7f   :  { %3534 = vmatprep.subr.bf16.mxu0 %v3533_v42  ;;  %3546 = vmatprep.subr.bf16.mxu1 %v3545_v33 }
 0xa82   :  { %3536 = vmatpush3.bf16.msra.mxu0 %v3533_v42  ;;  %3548 = vmatpush3.bf16.msra.mxu1 %v3545_v33 }
 0xa83   :  { %3550 = vmatprep.subr.bf16.mxu1 %v3549_v61 }
 0xa86   :  { %3552 = vmatpush3.bf16.msra.mxu1 %v3549_v61  ;;  %v3092_v61 = vld [vmem:[%s4271_s13] ss:$0 sm:$0xff] }
 0xa87   :  { %3394 = vmatprep.subr.mxu1 %v3685_v36 }
 0xb4c   :  { %v1180_v6 = vpop.f32.mrb[14].mxu1 }
 0xb4d   :  { %v3347_v7 = vpop.f32.mrb[15].mxu1 }
 0xb50   :  { %v1107_v10 = vpop.f32.mrb[8].mxu0 }
 0xb51   :  { %v1181_v11 = vadd.f32 %v1180_v6, %v1107_v10  ;;  %v3340_v12 = vpop.f32.mrb[9].mxu0 }
 0xb53   :  { %v1192_v14 = vadd.f32 %v3082_v45, %v1181_v11 }
 0xb55   :  { %v1194_v15 = vadd.f32 %v1192_v14, %v3830_v35  ;;  %v3083_v35 = vld [vmem:[%s4264_s6] ss:$0 sm:$0xff] }
 0xb57   :  { %v1200_v16 = vsel %vm69_vm0, %v1194_v15, 0.0 }
 0xb58   :  { %1201 = vadd.xlane.f32.xlu0 %v1200_v16 }
 0xb5c   :  { %1210 = vadd.xlane.f32.xlu0 %v1209_v18 }
 0xbe5   :  { %v1202_v19 = vpop.xlane.xlu0 %1201 }
 0xbe6   :  { %v1204_v20 = vmul.f32 0.03125, %v1202_v19 }
 0xbe8   :  { %v1206_v21 = vsub.f32 %v1194_v15, %v1204_v20 }
 0xbe9   :  { %v1211_v22 = vpop.xlane.xlu0 %1210 }
 0xbea   :  { %v1215_v23 = vmul.f32 0.03125, %v1211_v22  ;;  %v1208_v24 = vmul.f32 %v1206_v21, %v1206_v21 }
 0xbec   :  { %v1217_v25 = vadd.f32 1e-12, %v1215_v23  ;;  %v1212_v26 = vsel %vm69_vm0, %v1208_v24, 0.0 }
 0xbed   :  { %1213 = vadd.xlane.f32.xlu1 %v1212_v26 }
 0xbee   :  { %3641 = vrsqrt.f32 %v1217_v25 }
 0xbf8   :  { %v3642_v27 = vpop.eup %3641 }
 0xbf9   :  { %v1221_v28 = vmul.f32 %v3642_v27, %v1205_v13 }
 0xbfb   :  { %v1229_v31 = vmul.f32 %v3083_v35, %v1221_v28 }
 0xbfd   :  { %v3960_v32 = vadd.f32 %v3084_v29, %v1229_v31 }
 0xbff   :  { %3356 = vmatprep.mubr.msk.f32.mxu0 %vm69_vm0, %v3960_v32 }
 0xc7a   :  { %v1214_v43 = vpop.xlane.xlu1 %1213 }
 0xc7b   :  { %v1216_v45 = vmul.f32 0.03125, %v1214_v43 }
 0xc7d   :  { %v1218_v46 = vadd.f32 1e-12, %v1216_v45 }
 0xc7f   :  { %3643 = vrsqrt.f32 %v1218_v46  ;;  %v3098_v46 = vld [vmem:[%s4288_s26 + $0x28] sm:$0xff] }
 0xc89   :  { %v3644_v47 = vpop.eup %3643 }
 0xc8a   :  { %v1222_v48 = vmul.f32 %v3644_v47, %v1206_v21  ;;  %v3088_v21 = vld [vmem:[%s4269_s11] ss:$0 sm:$0xff] }
 0xc8c   :  { %v1230_v49 = vmul.f32 %v3083_v35, %v1222_v48  ;;  %v3099_v48 = vld [vmem:[%s4288_s26 + $0x30] sm:$0xff] }
 0xc8e   :  { %v1238_v50 = vadd.f32 %v3084_v29, %v1230_v49  ;;  %v3100_v49 = vld [vmem:[%s4288_s26 + $0x38] sm:$0xff] }
 0xc90   :  { %3357 = vmatmul.mubr.msk.f32.vlgmr.msra.gmra.mrb[10].mxu0 %vm69_vm0, %v1238_v50 }
 0xd63   :  { %v3358_v63 = vpop.f32.mrb[10].mxu0 }
 0xd64   :  { %v1328_v0 = vadd.f32 %v3358_v63, %v3085_v62  ;;  %v1322_v1 = vpop.f32.mrb[11].mxu0 }
 0xd65   :  { %v1323_v39 = vadd.f32 %v3085_v62, %v1322_v1 }
 0xd66   :  { %v1334_v2 = vmul.f32 0.044715, %v1328_v0  ;;  %v1332_v18 = vmul.f32 0.5, %v1328_v0 }
 0xd67   :  { %v1333_v3 = vmul.f32 0.044715, %v1323_v39  ;;  %v1331_v16 = vmul.f32 0.5, %v1323_v39 }
 0xd68   :  { %v1336_v4 = vmul.f32 %v1334_v2, %v1328_v0 }
 0xd69   :  { %v1335_v5 = vmul.f32 %v1333_v3, %v1323_v39 }
 0xd6a   :  { %v1338_v6 = vmul.f32 %v1336_v4, %v1328_v0 }
 0xd6b   :  { %v1337_v7 = vmul.f32 %v1335_v5, %v1323_v39 }
 0xd6c   :  { %v1340_v8 = vadd.f32 %v1338_v6, %v1328_v0 }
 0xd6d   :  { %v1339_v10 = vadd.f32 %v1337_v7, %v1323_v39  ;;  %v3102_v39 = vld [vmem:[%s4291_s27 + $0x1] ss:$0 sm:$0xff]  ;;  %s4292_s27 = smov 48  }
 0xd6e   :  { %v1342_v11 = vmul.f32 0.7978846, %v1340_v8 }
 0xd6f   :  { %v1341_v12 = vmul.f32 0.7978846, %v1339_v10 }
 0xd70   :  { %3645 = vtanh.f32 %v1342_v11 }
 0xd71   :  { %3647 = vtanh.f32 %v1341_v12 }
 0xd7a   :  { %v3646_v13 = vpop.eup %3645 }
 0xd7b   :  { %v3648_v14 = vpop.eup %3647  ;;  %v1346_v15 = vadd.f32 1.0, %v3646_v13 }
 0xd7c   :  { %v1345_v17 = vadd.f32 1.0, %v3648_v14 }
 0xd7d   :  { %v1348_v20 = vmul.f32 %v1346_v15, %v1332_v18 }
 0xd7e   :  { %v1347_v19 = vmul.f32 %v1345_v17, %v1331_v16 }
 0xd80   :  { %3375 = vmatprep.mubr.msk.f32.mxu1 %vm1364_vm4, %v1347_v19 }
 0xd81   :  { %3376 = vmatmul.mubr.msk.f32.vlgmr.msra.gmra.mrb[16].mxu1 %vm1364_vm4, %v1348_v20 }
 0xd82   :  { %3396 = vmatprep.mubr.msk.f32.mxu1 %vm3686_vm1, %v3685_v36 }
 0xe54   :  { %v3377_v22 = vpop.f32.mrb[16].mxu1 }
 0xe55   :  { %v1443_v23 = vadd.f32 %v3377_v22, %v3088_v21  ;;  %v1437_v24 = vpop.f32.mrb[17].mxu1 }
 0xe56   :  { %v1438_v25 = vadd.f32 %v3088_v21, %v1437_v24 }
 0xe57   :  { %v1447_v26 = vadd.f32 %v1443_v23, %v1238_v50  ;;  %v3557_v50 = vpack.c.bf16 %v3100_v49, %v3099_v48 }
 0xe58   :  { %v1446_v27 = vadd.f32 %v1438_v25, %v3960_v32  ;;  %v3097_v32 = vld [vmem:[%s4288_s26 + $0x20] sm:$0xff] }
 0xe59   :  { %v1453_v35 = vsel %vm69_vm0, %v1447_v26, 0.0  ;;  %v3553_v47 = vpack.c.bf16 %v3098_v46, %v3097_v32 }
 0xe5a   :  { %1454 = vadd.xlane.f32.xlu1 %v1453_v35  ;;  %v1450_v28 = vsel %vm69_vm0, %v1446_v27, 0.0 }
 0xe5b   :  { %1451 = vadd.xlane.f32.xlu0 %v1450_v28  ;;  %3554 = vmatprep.subr.bf16.mxu0 %v3553_v47 }
 0xe5c   :  { %3556 = vmatpush3.bf16.msra.mxu0 %v3553_v47 }
 0xe5d   :  { %3558 = vmatprep.subr.bf16.mxu0 %v3557_v50 }
 0xe60   :  { %3560 = vmatpush3.bf16.msra.mxu0 %v3557_v50 }
 0xe61   :  { %3389 = vmatprep.subr.mxu0 %v3685_v36 }
 0xee7   :  { %v1455_v29 = vpop.xlane.xlu1 %1454 }
 0xee8   :  { %v1457_v31 = vmul.f32 0.03125, %v1455_v29  ;;  %v1452_v34 = vpop.xlane.xlu0 %1451  ;;  %v3095_v29 = vld [vmem:[%s4262_s4 + $0x30] sm:$0xff] }
 0xee9   :  { %v1456_v37 = vmul.f32 0.03125, %v1452_v34 }
 0xeea   :  { %v1459_v38 = vsub.f32 %v1447_v26, %v1457_v31  ;;  %v3096_v31 = vld [vmem:[%s4262_s4 + $0x38] sm:$0xff] }
 0xeeb   :  { %v1458_v40 = vsub.f32 %v1446_v27, %v1456_v37  ;;  %v3562_v34 = vpack.c.bf16 %v3096_v31, %v3095_v29 }
 0xeec   :  { %v1461_v41 = vmul.f32 %v1459_v38, %v1459_v38 }
 0xeed   :  { %v1460_v42 = vmul.f32 %v1458_v40, %v1458_v40 }
 0xeee   :  { %v1465_v43 = vsel %vm69_vm0, %v1461_v41, 0.0 }
 0xeef   :  { %1466 = vadd.xlane.f32.xlu1 %v1465_v43  ;;  %v1462_v45 = vsel %vm69_vm0, %v1460_v42, 0.0  ;;  %v3093_v42 = vld [vmem:[%s4262_s4 + $0x20] sm:$0xff]  ;;  %v3094_v43 = vld [vmem:[%s4262_s4 + $0x28] sm:$0xff] }
 0xef0   :  { %1463 = vadd.xlane.f32.xlu0 %v1462_v45  ;;  %v4095_v46 = vpack.c.bf16 %v3094_v43, %v3093_v42 }
 0xf7c   :  { %v1467_v51 = vpop.xlane.xlu1 %1466 }
 0xf7d   :  { %v1469_v52 = vmul.f32 0.03125, %v1467_v51  ;;  %v1464_v53 = vpop.xlane.xlu0 %1463 }
 0xf7e   :  { %v1468_v54 = vmul.f32 0.03125, %v1464_v53 }
 0xf7f   :  { %v1471_v55 = vadd.f32 1e-12, %v1469_v52 }
 0xf80   :  { %v1470_v56 = vadd.f32 1e-12, %v1468_v54 }
 0xf81   :  { %3649 = vrsqrt.f32 %v1471_v55 }
 0xf82   :  { %3651 = vrsqrt.f32 %v1470_v56 }
 0xf8b   :  { %v3650_v57 = vpop.eup %3649 }
 0xf8c   :  { %v3652_v33 = vpop.eup %3651  ;;  %v1475_v59 = vmul.f32 %v3650_v57, %v1459_v38 }
 0xf8d   :  { %v1474_v60 = vmul.f32 %v3652_v33, %v1458_v40 }
 0xf8e   :  { %v1483_v62 = vmul.f32 %v3091_v58, %v1475_v59 }
 0xf8f   :  { %v1482_v63 = vmul.f32 %v3091_v58, %v1474_v60 }
 0xf90   :  { %v4038_v1 = vadd.f32 %v3092_v61, %v1483_v62 }
 0xf91   :  { %v4036_v0 = vadd.f32 %v3092_v61, %v1482_v63 }
 0xf93   :  { %3386 = vmatprep.mubr.msk.f32.mxu0 %vm69_vm0, %v4036_v0 }
 0xf94   :  { %3387 = vmatmul.mubr.msk.f32.vlgmr.msra.gmra.mrb[12].mxu0 %vm69_vm0, %v4038_v1 }
 0xf95   :  { %3391 = vmatprep.mubr.msk.f32.mxu0 %vm3686_vm1, %v3685_v36 }
0x1067   :  { %v3388_v2 = vpop.f32.mrb[12].mxu0 }
0x1068   :  { %v4049_v3 = vadd.f32 %v3388_v2, %v3102_v39  ;;  %v1582_v4 = vpop.f32.mrb[13].mxu0 }
0x1069   :  { %v1583_v5 = vadd.f32 %v3102_v39, %v1582_v4 }
0x106b   :  { %1759 = vrot.lane.b32.xlu1 %v1583_v5, %s3688_s3  ;;  %1592 = vrot.lane.b32.xlu0 %v1583_v5, %s3687_s28 }
0x106f   :  { %1757 = vrot.lane.b32.xlu1 %v1583_v5, %s3690_s21 }
0x10dd   :  { %v1593_v6 = vpop.permute.xlu0 %1592  ;;  %v1760_v7 = vpop.permute.xlu1 %1759 }
0x10de   :  { %3390 = vmatpush3.xpose.msk.msra.mxu0 %vm213_vm2, %v1593_v6 }
0x10df   :  { %3399 = vmatprep.subr.mxu0 %v3685_v36 }
0x10e1   :  { %3392 = vmatmul.mubr.msk.f32.vlgmr.msra.gmra.mrb[14].mxu0 %vm213_vm2, %v1583_v5  ;;  %v1758_v8 = vpop.permute.xlu1 %1757 }
0x10e2   :  { %3400 = vmatpush3.xpose.msk.msra.mxu0 %vm213_vm2, %v1760_v7  ;;  %3401 = vmatprep.mubr.msk.f32.mxu0 %vm3686_vm1, %v3685_v36  ;;  %v3122_v7 = vld [vmem:[%s4263_s5 + $0x1] ss:$0 sm:$0xff] }
0x10e3   :  { %3561 = vmatprep.subr.bf16.mxu0 %v3692_v9 }
0x10e5   :  { %3402 = vmatmul.mubr.msk.f32.vlgmr.msra.gmra.mrb[16].mxu0 %vm213_vm2, %v1758_v8 }
0x10e6   :  { %3413 = vmatprep.mubr.msk.f32.mxu0 %vm3686_vm1, %v3685_v36  ;;  %3563 = vmatpush3.bf16.msra.mxu0 %v3562_v34 }
0x10e7   :  { %3423 = vmatprep.subr.mxu0 %v3685_v36 }
0x11b4   :  { %v1664_v10 = vpop.f32.mrb[14].mxu0 }
0x11b5   :  { %v1668_v11 = vmul.f32 0.25, %v1664_v10  ;;  %v3393_v12 = vpop.f32.mrb[15].mxu0 }
0x11b7   :  { %v1669_v13 = vadd.f32 %v3854_v44, %v1668_v11 }
0x11b8   :  { %v1831_v14 = vpop.f32.mrb[16].mxu0 }
0x11b9   :  { %v1835_v15 = vmul.f32 0.25, %v1831_v14  ;;  %v3403_v16 = vpop.f32.mrb[17].mxu0  ;;  %v1670_v17 = vsel %vm296_vm3, %v1669_v13, -inf }
0x11ba   :  { %1671 = vmax.xlane.f32.xlu1 %v1670_v17 }
0x11bb   :  { %v1836_v18 = vadd.f32 %v3854_v44, %v1835_v15 }
0x11bd   :  { %v1837_v19 = vsel %vm296_vm3, %v1836_v18, -inf }
0x11be   :  { %1838 = vmax.xlane.f32.xlu0 %v1837_v19 }
0x11cb   :  { %1681 = vrot.lane.b32.xlu1 %v1583_v5, %s3689_s0 }
0x11cf   :  { %2071 = vrot.lane.b32.xlu1 %v4049_v3, %s3687_s28 }
0x11d3   :  { %2238 = vrot.lane.b32.xlu1 %v4049_v3, %s3688_s3 }
0x11d7   :  { %2236 = vrot.lane.b32.xlu1 %v4049_v3, %s3690_s21 }
0x1247   :  { %v1672_v20 = vpop.xlane.xlu1 %1671 }
0x1248   :  { %v1673_v21 = vsub.f32 %v1669_v13, %v1672_v20 }
0x124a   :  { %v1674_v22 = vmul.f32 1.442695, %v1673_v21 }
0x124b   :  { %v1682_v23 = vpop.permute.xlu1 %1681  ;;  %v1839_v24 = vpop.xlane.xlu0 %1838 }
0x124c   :  { %3653 = vpow2.f32 %v1674_v22  ;;  %v1840_v44 = vsub.f32 %v1836_v18, %v1839_v24  ;;  %3395 = vmatpush3.msra.mxu1 %v1682_v23 }
0x124d   :  { %3404 = vmatprep.subr.mxu1 %v3685_v36 }
0x124e   :  { %v1841_v25 = vmul.f32 1.442695, %v1840_v44 }
0x124f   :  { %v2072_v48 = vpop.permute.xlu1 %2071 }
0x1250   :  { %3655 = vpow2.f32 %v1841_v25 }
0x1253   :  { %v2239_v53 = vpop.permute.xlu1 %2238 }
0x1256   :  { %v3654_v26 = vpop.eup %3653 }
0x1257   :  { %v1676_v27 = vsel %vm296_vm3, %v3654_v26, 0.0  ;;  %v2237_v54 = vpop.permute.xlu1 %2236 }
0x1258   :  { %1677 = vadd.xlane.f32.xlu0 %v1676_v27 }
0x125a   :  { %v3656_v35 = vpop.eup %3655 }
0x125b   :  { %v1843_v28 = vsel %vm296_vm3, %v3656_v35, 0.0 }
0x125c   :  { %1844 = vadd.xlane.f32.xlu0 %v1843_v28 }
0x1272   :  { %1848 = vrot.lane.b32.xlu0 %v1583_v5, %s4292_s27 }
0x12e5   :  { %v1678_v37 = vpop.xlane.xlu0 %1677 }
0x12e6   :  { %3657 = vrcp.f32 %v1678_v37 }
0x12e9   :  { %v1845_v38 = vpop.xlane.xlu0 %1844 }
0x12ea   :  { %3659 = vrcp.f32 %v1845_v38 }
0x12ed   :  { %v1849_v45 = vpop.permute.xlu0 %1848 }
0x12f0   :  { %v3658_v40 = vpop.eup %3657 }
0x12f1   :  { %v1680_v41 = vmul.f32 %v3658_v40, %v3654_v26 }
0x12f3   :  { %3397 = vmatmul.mubr.msk.f32.vlgmr.msra.gmra.mrb[18].mxu1 %vm296_vm3, %v1680_v41 }
0x12f4   :  { %v3660_v32 = vpop.eup %3659  ;;  %3405 = vmatpush3.msra.mxu1 %v1849_v45  ;;  %3406 = vmatprep.mubr.msk.f32.mxu1 %vm3686_vm1, %v3685_v36 }
0x12f5   :  { %v1847_v47 = vmul.f32 %v3660_v32, %v3656_v35  ;;  %3564 = vmatprep.subr.bf16.mxu1 %v3692_v9 }
0x12f7   :  { %3407 = vmatmul.mubr.msk.f32.vlgmr.msra.gmra.mrb[20].mxu1 %vm296_vm3, %v1847_v47 }
0x12f8   :  { %3566 = vmatpush3.bf16.msra.mxu1 %v4095_v46  ;;  %3420 = vmatprep.mubr.msk.f32.mxu1 %vm3686_vm1, %v3685_v36 }
0x12f9   :  { %3428 = vmatprep.subr.mxu1 %v3685_v36 }
0x13c6   :  { %v1753_v49 = vpop.f32.mrb[18].mxu1 }
0x13c7   :  { %v3398_v50 = vpop.f32.mrb[19].mxu1  ;;  %3421 = vmatmul.mubr.msk.f32.vlgmr.msra.gmra.mrb[22].mxu1 %vm213_vm2, %v1753_v49 }
0x13c8   :  { %3430 = vmatprep.mubr.msk.f32.mxu1 %vm3686_vm1, %v3685_v36 }
0x13ca   :  { %v1920_v51 = vpop.f32.mrb[20].mxu1 }
0x13cb   :  { %v3408_v52 = vpop.f32.mrb[21].mxu1  ;;  %3414 = vmatmul.mubr.msk.f32.vlgmr.msra.gmra.mrb[18].mxu0 %vm213_vm2, %v1920_v51 }
0x13cc   :  { %3424 = vmatpush3.xpose.msk.msra.mxu0 %vm213_vm2, %v2072_v48  ;;  %3425 = vmatprep.mubr.msk.f32.mxu0 %vm3686_vm1, %v3685_v36 }
0x13cd   :  { %3433 = vmatprep.subr.mxu0 %v3685_v36 }
0x13cf   :  { %3426 = vmatmul.mubr.msk.f32.vlgmr.msra.gmra.mrb[20].mxu0 %vm213_vm2, %v4049_v3 }
0x13d0   :  { %3434 = vmatpush3.xpose.msk.msra.mxu0 %vm213_vm2, %v2239_v53  ;;  %3435 = vmatprep.mubr.msk.f32.mxu0 %vm3686_vm1, %v3685_v36 }
0x13d1   :  { %3567 = vmatprep.subr.bf16.mxu0 %v3692_v9 }
0x13d3   :  { %3436 = vmatmul.mubr.msk.f32.vlgmr.msra.gmra.mrb[22].mxu0 %vm213_vm2, %v2237_v54 }
0x13d4   :  { %3569 = vmatpush3.bf16.msra.mxu0 %v3562_v34  ;;  %3447 = vmatprep.mubr.msk.f32.mxu0 %vm3686_vm1, %v3685_v36 }
0x149a   :  { %v2066_v55 = vpop.f32.mrb[22].mxu1 }
0x149b   :  { %v3422_v56 = vpop.f32.mrb[23].mxu1 }
0x149c   :  { %v3126_v56 = vld [vmem:[%s4265_s7 + $0x1] ss:$0 sm:$0xff] }
0x149e   :  { %v1993_v57 = vpop.f32.mrb[18].mxu0 }
0x149f   :  { %v2067_v58 = vadd.f32 %v2066_v55, %v1993_v57  ;;  %v3415_v33 = vpop.f32.mrb[19].mxu0 }
0x14a0   :  { %v3127_v33 = vld [vmem:[%s4266_s8 + $0x20] sm:$0xff] }
0x14a1   :  { %v2557_v8 = vadd.f32 %v3122_v7, %v2067_v58 }
0x14a2   :  { %v2143_v59 = vpop.f32.mrb[20].mxu0 }
0x14a3   :  { %v2147_v60 = vmul.f32 0.25, %v2143_v59  ;;  %v3427_v61 = vpop.f32.mrb[21].mxu0  ;;  %v2559_v10 = vadd.f32 %v2557_v8, %v4036_v0  ;;  %v3128_v59 = vld [vmem:[%s4266_s8 + $0x28] sm:$0xff] }
0x14a4   :  { %v3129_v61 = vld [vmem:[%s4266_s8 + $0x30] sm:$0xff] }
0x14a5   :  { %v2148_v62 = vadd.f32 %v3922_v30, %v2147_v60  ;;  %v2565_v11 = vsel %vm69_vm0, %v2559_v10, 0.0  ;;  %v3573_v60 = vpack.c.bf16 %v3128_v59, %v3127_v33 }
0x14a6   :  { %v2310_v63 = vpop.f32.mrb[22].mxu0 }
0x14a7   :  { %v2314_v39 = vmul.f32 0.25, %v2310_v63  ;;  %v3437_v2 = vpop.f32.mrb[23].mxu0  ;;  %v2149_v4 = vsel %vm296_vm3, %v2148_v62, -inf  ;;  %3574 = vmatprep.subr.bf16.mxu0 %v3573_v60 }
0x14a8   :  { %2150 = vmax.xlane.f32.xlu0 %v2149_v4 }
0x14a9   :  { %v2315_v5 = vadd.f32 %v3922_v30, %v2314_v39 }
0x14ab   :  { %v2316_v6 = vsel %vm296_vm3, %v2315_v5, -inf }
0x14ac   :  { %2317 = vmax.xlane.f32.xlu1 %v2316_v6 }
0x14bd   :  { %2327 = vrot.lane.b32.xlu1 %v4049_v3, %s4292_s27 }
0x14e1   :  { %2566 = vadd.xlane.f32.xlu1 %v2565_v11  ;;  %v3136_v11 = vld [vmem:[%s4267_s10 + $0x48] sm:$0xff] }
0x1535   :  { %v2151_v12 = vpop.xlane.xlu0 %2150 }
0x1536   :  { %v2152_v13 = vsub.f32 %v2148_v62, %v2151_v12  ;;  %v3130_v62 = vld [vmem:[%s4266_s8 + $0x38] sm:$0xff] }
0x1537   :  { %v3577_v63 = vpack.c.bf16 %v3130_v62, %v3129_v61  ;;  %v2866_v62 = vld [vmem:[%s4272_s16 + $0x8] sm:$0xff] }
0x1538   :  { %v2153_v14 = vmul.f32 1.442695, %v2152_v13  ;;  %v3137_v13 = vld [vmem:[%s4267_s10 + $0x50] sm:$0xff] }
0x1539   :  { %v2318_v30 = vpop.xlane.xlu1 %2317 }
0x153a   :  { %3661 = vpow2.f32 %v2153_v14  ;;  %v2319_v15 = vsub.f32 %v2315_v5, %v2318_v30  ;;  %v3138_v14 = vld [vmem:[%s4267_s10 + $0x58] sm:$0xff] }
0x153b   :  { %v3585_v30 = vpack.c.bf16 %v3138_v14, %v3137_v13  ;;  %v3149_v13 = vld [vmem:[%s4270_s12 + $0x1] ss:$0 sm:$0xff] }
0x153c   :  { %v2320_v16 = vmul.f32 1.442695, %v2319_v15  ;;  %v3139_v15 = vld [vmem:[%s4267_s10 + $0x60] sm:$0xff] }
0x153d   :  { %v2328_v44 = vpop.permute.xlu1 %2327 }
0x153e   :  { %3663 = vpow2.f32 %v2320_v16  ;;  %v3140_v16 = vld [vmem:[%s4267_s10 + $0x68] sm:$0xff] }
0x1544   :  { %v3662_v17 = vpop.eup %3661 }
0x1545   :  { %v2155_v18 = vsel %vm296_vm3, %v3662_v17, 0.0 }
0x1546   :  { %2156 = vadd.xlane.f32.xlu0 %v2155_v18  ;;  %v3141_v18 = vld [vmem:[%s4267_s10 + $0x70] sm:$0xff] }
0x1548   :  { %v3664_v19 = vpop.eup %3663 }
0x1549   :  { %v2322_v20 = vsel %vm296_vm3, %v3664_v19, 0.0 }
0x154a   :  { %2323 = vadd.xlane.f32.xlu0 %v2322_v20 }
0x1560   :  { %2160 = vrot.lane.b32.xlu0 %v4049_v3, %s3689_s0 }
0x156e   :  { %v2567_v29 = vpop.xlane.xlu1 %2566 }
0x156f   :  { %v2571_v37 = vmul.f32 0.03125, %v2567_v29 }
0x1571   :  { %v2573_v41 = vsub.f32 %v2559_v10, %v2571_v37  ;;  %v3135_v10 = vld [vmem:[%s4267_s10 + $0x40] sm:$0xff] }
0x1572   :  { %v3581_v12 = vpack.c.bf16 %v3136_v11, %v3135_v10 }
0x1573   :  { %v2575_v45 = vmul.f32 %v2573_v41, %v2573_v41 }
0x1575   :  { %v2577_v32 = vsel %vm69_vm0, %v2575_v45, 0.0  ;;  %v3144_v45 = vld [vmem:[%s4269_s11 + $0x1] ss:$0 sm:$0xff] }
0x15d3   :  { %v2157_v0 = vpop.xlane.xlu0 %2156 }
0x15d4   :  { %3665 = vrcp.f32 %v2157_v0  ;;  %v3132_v0 = vld [vmem:[%s4268_s9 + $0x1] ss:$0 sm:$0xff] }
0x15d7   :  { %v2324_v21 = vpop.xlane.xlu0 %2323 }
0x15d8   :  { %3667 = vrcp.f32 %v2324_v21 }
0x15db   :  { %v2161_v22 = vpop.permute.xlu0 %2160 }
0x15dc   :  { %3429 = vmatpush3.msra.mxu1 %v2161_v22 }
0x15dd   :  { %3438 = vmatprep.subr.mxu1 %v3685_v36 }
0x15de   :  { %v3666_v23 = vpop.eup %3665 }
0x15df   :  { %v2159_v24 = vmul.f32 %v3666_v23, %v3662_v17  ;;  %v3589_v17 = vpack.c.bf16 %v3140_v16, %v3139_v15  ;;  %v3150_v16 = vld [vmem:[%s4271_s13 + $0x1] ss:$0 sm:$0xff] }
0x15e1   :  { %3431 = vmatmul.mubr.msk.f32.vlgmr.msra.gmra.mrb[24].mxu1 %vm296_vm3, %v2159_v24 }
0x15e2   :  { %v3668_v25 = vpop.eup %3667  ;;  %3439 = vmatpush3.msra.mxu1 %v2328_v44  ;;  %3440 = vmatprep.mubr.msk.f32.mxu1 %vm3686_vm1, %v3685_v36 }
0x15e3   :  { %v2326_v26 = vmul.f32 %v3668_v25, %v3664_v19  ;;  %3570 = vmatprep.subr.bf16.mxu1 %v3692_v9  ;;  %v3142_v19 = vld [vmem:[%s4267_s10 + $0x78] sm:$0xff] }
0x15e4   :  { %v3593_v20 = vpack.c.bf16 %v3142_v19, %v3141_v18 }
0x15e5   :  { %3441 = vmatmul.mubr.msk.f32.vlgmr.msra.gmra.mrb[26].mxu1 %vm296_vm3, %v2326_v26 }
0x15e6   :  { %3572 = vmatpush3.bf16.msra.mxu1 %v4095_v46  ;;  %3454 = vmatprep.mubr.msk.f32.mxu1 %vm3686_vm1, %v3685_v36 }
0x15e7   :  { %3582 = vmatprep.subr.bf16.mxu1 %v3581_v12 }
0x16b4   :  { %v2232_v3 = vpop.f32.mrb[24].mxu1 }
0x16b5   :  { %v3432_v27 = vpop.f32.mrb[25].mxu1  ;;  %3455 = vmatmul.mubr.msk.f32.vlgmr.msra.gmra.mrb[28].mxu1 %vm213_vm2, %v2232_v3 }
0x16b6   :  { %3584 = vmatpush3.bf16.msra.mxu1 %v3581_v12 }
0x16b7   :  { %3586 = vmatprep.subr.bf16.mxu1 %v3585_v30 }
0x16b8   :  { %v2399_v35 = vpop.f32.mrb[26].mxu1 }
0x16b9   :  { %v3442_v28 = vpop.f32.mrb[27].mxu1  ;;  %3448 = vmatmul.mubr.msk.f32.vlgmr.msra.gmra.mrb[24].mxu0 %vm213_vm2, %v2399_v35 }
0x16ba   :  { %3576 = vmatpush3.bf16.msra.mxu0 %v3573_v60  ;;  %3588 = vmatpush3.bf16.msra.mxu1 %v3585_v30 }
0x16bb   :  { %3578 = vmatprep.subr.bf16.mxu0 %v3577_v63  ;;  %3590 = vmatprep.subr.bf16.mxu1 %v3589_v17 }
0x16be   :  { %3580 = vmatpush3.bf16.msra.mxu0 %v3577_v63  ;;  %3592 = vmatpush3.bf16.msra.mxu1 %v3589_v17 }
0x16bf   :  { %3594 = vmatprep.subr.bf16.mxu1 %v3593_v20 }
0x16c2   :  { %3596 = vmatpush3.bf16.msra.mxu1 %v3593_v20 }
0x1788   :  { %v2545_v31 = vpop.f32.mrb[28].mxu1 }
0x1789   :  { %v3456_v34 = vpop.f32.mrb[29].mxu1 }
0x178c   :  { %v2472_v9 = vpop.f32.mrb[24].mxu0 }
0x178d   :  { %v2546_v38 = vadd.f32 %v2545_v31, %v2472_v9  ;;  %v3449_v40 = vpop.f32.mrb[25].mxu0 }
0x178f   :  { %v2558_v42 = vadd.f32 %v3122_v7, %v2546_v38 }
0x1791   :  { %v2560_v43 = vadd.f32 %v2558_v42, %v4038_v1  ;;  %v3125_v1 = vld [vmem:[%s4264_s6 + $0x1] ss:$0 sm:$0xff] }
0x1793   :  { %v2568_v36 = vsel %vm69_vm0, %v2560_v43, 0.0 }
0x1794   :  { %2569 = vadd.xlane.f32.xlu0 %v2568_v36 }
0x1798   :  { %2578 = vadd.xlane.f32.xlu0 %v2577_v32 }
0x1821   :  { %v2570_v46 = vpop.xlane.xlu0 %2569 }
0x1822   :  { %v2572_v47 = vmul.f32 0.03125, %v2570_v46 }
0x1824   :  { %v2574_v48 = vsub.f32 %v2560_v43, %v2572_v47 }
0x1825   :  { %v2579_v49 = vpop.xlane.xlu0 %2578 }
0x1826   :  { %v2583_v50 = vmul.f32 0.03125, %v2579_v49  ;;  %v2576_v51 = vmul.f32 %v2574_v48, %v2574_v48 }
0x1828   :  { %v2585_v52 = vadd.f32 1e-12, %v2583_v50  ;;  %v2580_v53 = vsel %vm69_vm0, %v2576_v51, 0.0 }
0x1829   :  { %2581 = vadd.xlane.f32.xlu1 %v2580_v53 }
0x182a   :  { %3669 = vrsqrt.f32 %v2585_v52 }
0x1834   :  { %v3670_v54 = vpop.eup %3669 }
0x1835   :  { %v2589_v55 = vmul.f32 %v3670_v54, %v2573_v41 }
0x1837   :  { %v2597_v57 = vmul.f32 %v3125_v1, %v2589_v55 }
0x1839   :  { %v4156_v58 = vadd.f32 %v3126_v56, %v2597_v57 }
0x183b   :  { %3465 = vmatprep.mubr.msk.f32.mxu0 %vm69_vm0, %v4156_v58 }
0x18b6   :  { %v2582_v39 = vpop.xlane.xlu1 %2581 }
0x18b7   :  { %v2584_v2 = vmul.f32 0.03125, %v2582_v39  ;;  %v2867_v39 = vld [vmem:[%s4272_s16 + $0x10] sm:$0xff] }
0x18b9   :  { %v2586_v4 = vadd.f32 1e-12, %v2584_v2  ;;  %v2868_v2 = vld [vmem:[%s4272_s16 + $0x18] sm:$0xff] }
0x18bb   :  { %3671 = vrsqrt.f32 %v2586_v4  ;;  %v3601_v4 = vpack.c.bf16 %v2868_v2, %v2867_v39 }
0x18c5   :  { %v3672_v5 = vpop.eup %3671 }
0x18c6   :  { %v2590_v6 = vmul.f32 %v3672_v5, %v2574_v48 }
0x18c8   :  { %v2598_v7 = vmul.f32 %v3125_v1, %v2590_v6 }
0x18ca   :  { %v2606_v8 = vadd.f32 %v3126_v56, %v2598_v7 }
0x18cc   :  { %3466 = vmatmul.mubr.msk.f32.vlgmr.msra.gmra.mrb[26].mxu0 %vm69_vm0, %v2606_v8 }
0x199f   :  { %v3467_v21 = vpop.f32.mrb[26].mxu0 }
0x19a0   :  { %v2698_v22 = vadd.f32 %v3467_v21, %v3132_v0  ;;  %v2692_v23 = vpop.f32.mrb[27].mxu0  ;;  %v2960_v21 = vld [vmem:[%s4273_s18 + $0x8] sm:$0xff] }
0x19a1   :  { %v2693_v24 = vadd.f32 %v3132_v0, %v2692_v23  ;;  %v2959_v0 = vld [vmem:[%s4273_s18] sm:$0xff] }
0x19a2   :  { %v2704_v44 = vmul.f32 0.044715, %v2698_v22  ;;  %v2702_v42 = vmul.f32 0.5, %v2698_v22  ;;  %v3605_v23 = vpack.c.bf16 %v2960_v21, %v2959_v0 }
0x19a3   :  { %v2703_v25 = vmul.f32 0.044715, %v2693_v24  ;;  %v2701_v40 = vmul.f32 0.5, %v2693_v24 }
0x19a4   :  { %v2706_v26 = vmul.f32 %v2704_v44, %v2698_v22 }
0x19a5   :  { %v2705_v3 = vmul.f32 %v2703_v25, %v2693_v24  ;;  %v3151_v25 = vld [vmem:[%s4274_s17] ss:$0 sm:$0xff] }
0x19a6   :  { %v2708_v27 = vmul.f32 %v2706_v26, %v2698_v22 }
0x19a7   :  { %v2707_v35 = vmul.f32 %v2705_v3, %v2693_v24 }
0x19a8   :  { %v2710_v28 = vadd.f32 %v2708_v27, %v2698_v22  ;;  %v2961_v22 = vld [vmem:[%s4273_s18 + $0x10] sm:$0xff] }
0x19a9   :  { %v2709_v29 = vadd.f32 %v2707_v35, %v2693_v24  ;;  %v2962_v24 = vld [vmem:[%s4273_s18 + $0x18] sm:$0xff] }
0x19aa   :  { %v2712_v31 = vmul.f32 0.7978846, %v2710_v28  ;;  %v3609_v44 = vpack.c.bf16 %v2962_v24, %v2961_v22 }
0x19ab   :  { %v2711_v34 = vmul.f32 0.7978846, %v2709_v29 }
0x19ac   :  { %3673 = vtanh.f32 %v2712_v31  ;;  %v3154_v31 = vld [vmem:[%s4275_s19] ss:$0 sm:$0xff] }
0x19ad   :  { %3675 = vtanh.f32 %v2711_v34 }
0x19b6   :  { %v3674_v37 = vpop.eup %3673 }
0x19b7   :  { %v3676_v9 = vpop.eup %3675  ;;  %v2716_v38 = vadd.f32 1.0, %v3674_v37 }
0x19b8   :  { %v2715_v41 = vadd.f32 1.0, %v3676_v9 }
0x19b9   :  { %v2718_v36 = vmul.f32 %v2716_v38, %v2702_v42 }
0x19ba   :  { %v2717_v43 = vmul.f32 %v2715_v41, %v2701_v40 }
0x19bc   :  { %3484 = vmatprep.mubr.msk.f32.mxu1 %vm1364_vm4, %v2717_v43 }
0x19bd   :  { %3485 = vmatmul.mubr.msk.f32.vlgmr.msra.gmra.mrb[30].mxu1 %vm1364_vm4, %v2718_v36 }
0x1a90   :  { %v3486_v32 = vpop.f32.mrb[30].mxu1 }
0x1a91   :  { %v2814_v46 = vadd.f32 %v3486_v32, %v3144_v45  ;;  %v2808_v47 = vpop.f32.mrb[31].mxu1 }
0x1a92   :  { %v2809_v48 = vadd.f32 %v3144_v45, %v2808_v47 }
0x1a93   :  { %v2818_v49 = vadd.f32 %v2814_v46, %v2606_v8 }
0x1a94   :  { %v2817_v50 = vadd.f32 %v2809_v48, %v4156_v58  ;;  %v2865_v58 = vld [vmem:[%s4272_s16] sm:$0xff] }
0x1a95   :  { %v2826_v51 = vsel %vm69_vm0, %v2818_v49, 0.0  ;;  %v3597_v63 = vpack.c.bf16 %v2866_v62, %v2865_v58 }
0x1a96   :  { %2827 = vadd.xlane.f32.xlu1 %v2826_v51  ;;  %v2823_v52 = vsel %vm69_vm0, %v2817_v50, 0.0 }
0x1a97   :  { %2824 = vadd.xlane.f32.xlu0 %v2823_v52  ;;  %3598 = vmatprep.subr.bf16.mxu0 %v3597_v63 }
0x1a98   :  { %3600 = vmatpush3.bf16.msra.mxu0 %v3597_v63 }
0x1a99   :  { %3602 = vmatprep.subr.bf16.mxu0 %v3601_v4 }
0x1a9c   :  { %3604 = vmatpush3.bf16.msra.mxu0 %v3601_v4 }
0x1a9d   :  { %3606 = vmatprep.subr.bf16.mxu0 %v3605_v23 }
0x1b23   :  { %v2828_v53 = vpop.xlane.xlu1 %2827 }
0x1b24   :  { %v2830_v54 = vmul.f32 0.03125, %v2828_v53  ;;  %v2825_v1 = vpop.xlane.xlu0 %2824 }
0x1b25   :  { %v2829_v55 = vmul.f32 0.03125, %v2825_v1 }
0x1b26   :  { %v2832_v56 = vsub.f32 %v2818_v49, %v2830_v54 }
0x1b27   :  { %v2831_v57 = vsub.f32 %v2817_v50, %v2829_v55 }
0x1b28   :  { %v2834_v33 = vmul.f32 %v2832_v56, %v2832_v56 }
0x1b29   :  { %v2833_v59 = vmul.f32 %v2831_v57, %v2831_v57 }
0x1b2a   :  { %v2838_v60 = vsel %vm69_vm0, %v2834_v33, 0.0 }
0x1b2b   :  { %2839 = vadd.xlane.f32.xlu1 %v2838_v60  ;;  %v2835_v61 = vsel %vm69_vm0, %v2833_v59, 0.0 }
0x1b2c   :  { %2836 = vadd.xlane.f32.xlu0 %v2835_v61 }
0x1bb8   :  { %v2840_v5 = vpop.xlane.xlu1 %2839 }
0x1bb9   :  { %v2842_v6 = vmul.f32 0.03125, %v2840_v5  ;;  %v2837_v7 = vpop.xlane.xlu0 %2836 }
0x1bba   :  { %v2841_v8 = vmul.f32 0.03125, %v2837_v7 }
0x1bbb   :  { %v2844_v10 = vadd.f32 1e-12, %v2842_v6 }
0x1bbc   :  { %v2843_v11 = vadd.f32 1e-12, %v2841_v8 }
0x1bbd   :  { %3677 = vrsqrt.f32 %v2844_v10 }
0x1bbe   :  { %3679 = vrsqrt.f32 %v2843_v11 }
0x1bc7   :  { %v3678_v12 = vpop.eup %3677 }
0x1bc8   :  { %v3680_v14 = vpop.eup %3679  ;;  %v2848_v30 = vmul.f32 %v3678_v12, %v2832_v56 }
0x1bc9   :  { %v2847_v15 = vmul.f32 %v3680_v14, %v2831_v57 }
0x1bca   :  { %v2856_v17 = vmul.f32 %v3149_v13, %v2848_v30 }
0x1bcb   :  { %v2855_v18 = vmul.f32 %v3149_v13, %v2847_v15 }
0x1bcc   :  { %v2864_v20 = vadd.f32 %v3150_v16, %v2856_v17 }
0x1bcd   :  { %v2863_v19 = vadd.f32 %v3150_v16, %v2855_v18 }
0x1bcf   :  { %3495 = vmatprep.mubr.msk.f32.mxu0 %vm69_vm0, %v2863_v19 }
0x1bd0   :  { %3496 = vmatmul.mubr.msk.f32.vlgmr.msra.gmra.mrb[28].mxu0 %vm69_vm0, %v2864_v20 }
0x1bd1   :  { %3608 = vmatpush3.bf16.msra.mxu0 %v3605_v23 }
0x1bd2   :  { %3610 = vmatprep.subr.bf16.mxu0 %v3609_v44 }
0x1bd5   :  { %3612 = vmatpush3.bf16.msra.mxu0 %v3609_v44 }
0x1ca3   :  { %v3497_v26 = vpop.f32.mrb[28].mxu0 }
0x1ca4   :  { %v2954_v3 = vadd.f32 %v3497_v26, %v3151_v25  ;;  %v2948_v27 = vpop.f32.mrb[29].mxu0 }
0x1ca5   :  { %v2949_v35 = vadd.f32 %v3151_v25, %v2948_v27 }
0x1ca7   :  { %3681 = vtanh.f32 %v2949_v35 }
0x1ca8   :  { %3683 = vtanh.f32 %v2954_v3 }
0x1cb1   :  { %v3682_v28 = vpop.eup %3681 }
0x1cb2   :  { %v3684_v29 = vpop.eup %3683  ;;  %3506 = vmatprep.mubr.msk.f32.mxu0 %vm69_vm0, %v3682_v28 }
0x1cb3   :  { %3507 = vmatmul.mubr.msk.f32.vlgmr.msra.gmra.mrb[30].mxu0 %vm69_vm0, %v3684_v29 }
0x1d86   :  { %v3508_v34 = vpop.f32.mrb[30].mxu0 }
0x1d87   :  { %v3048_v37 = vadd.f32 %v3508_v34, %v3154_v31  ;;  %v3042_v9 = vpop.f32.mrb[31].mxu0 }
0x1d88   :  { %v3043_v38 = vadd.f32 %v3154_v31, %v3042_v9 }
0x1d89   :  { %3053 = vst.msk [vmem:[%s4276_s20 + $0x8] sm:$0xff] %vm3051_vm5, %v3048_v37 }
0x1d8a   :  { %3052 = vst.msk [vmem:[%s4276_s20] sm:$0xff] %vm3051_vm5, %v3043_v38 }

</bundles_post_ra>
